<compile_context>
chip_gen: v7x
topology: tpu7x:2x2x1
jax: 0.10.0
libtpu: 0.0.40
codegen_flags: <defaults>
</compile_context>

<pallas_src>
import functools

import jax
import jax.numpy as jnp
import numpy as np
from jax import lax
from jax.experimental import pallas as pl
from jax.experimental.pallas import tpu as pltpu


def _round_up(v, m):
    return (v + m - 1) // m * m


def _largest_divisor_leq(n, cap):
    cap = max(1, min(n, cap))
    for b in range(cap, 0, -1):
        if n % b == 0:
            return b
    return 1


def _make_dense_block_kernel(num_layers, c0p, gp, wp, lanes, mxu_dtype):
    """Fused DenseBlock kernel factory.

    Per-grid-step ref layout (lane axis = B stacked, flattened zero-padded
    spatial images, padded to a multiple of 128):
      x_ref:     (c0p, lanes)        channel-padded, channel-major input
      mask_ref:  (1, lanes)          1.0 at interior spatial positions
      scale_ref: (cin_max_p, L)      folded BN scale, column i = layer i
      shift_ref: (cin_max_p, L)      folded BN shift
      bias_ref:  (gp, L)             conv bias
      w_refs[i]: (gp, 9*cin_p_i)     K = tap*cin_p_i + padded input channel
      out_ref:   (c_state_p, lanes)  doubles as the VMEM concat state
      col_ref:   (9*cin_max_p, lanes) im2col scratch (mxu_dtype)
    """
    # Tap offset in the flattened padded-spatial index: d = oy*Wp + ox.
    tap_shifts = [oy * wp + ox for oy in (-1, 0, 1) for ox in (-1, 0, 1)]

    def kernel(*refs):
        x_ref, mask_ref, scale_ref, shift_ref, bias_ref = refs[:5]
        w_refs = refs[5:5 + num_layers]
        out_ref = refs[5 + num_layers]
        col_ref = refs[6 + num_layers]

        mask = mask_ref[...]                               # (1, lanes) f32

        # Output block doubles as the concat state:
        #   channels [0, c0p)                   = (padded) block input
        #   channels [c0p+i*gp, c0p+(i+1)*gp)   = (padded) layer-i output
        out_ref[0:c0p, :] = x_ref[...]

        for i in range(num_layers):
            cin_p = c0p + i * gp

            # BatchNorm (eval, folded) + ReLU in f32; re-zero the padded
            # border so the conv sees zero-padded activations (padding=1).
            xin = out_ref[0:cin_p, :]
            scale = scale_ref[0:cin_p, i:i + 1]
            shift = shift_ref[0:cin_p, i:i + 1]
            y = jnp.maximum(xin * scale + shift, 0.0) * mask
            y = y.astype(mxu_dtype)

            # im2col: 9 lane-rolled copies stored into the VMEM scratch at
            # tile-aligned row offsets.  shifted[q] = y[q + d]; wrap only
            # touches non-interior positions, never used as conv outputs.
            for t, d in enumerate(tap_shifts):
                shifted = y if d == 0 else pltpu.roll(y, shift=(-d) % lanes, axis=1)
                col_ref[t * cin_p:(t + 1) * cin_p, :] = shifted

            # One MXU matmul per layer, lane-dense N, f32 accumulation.
            acc = jnp.dot(w_refs[i][...], col_ref[0:9 * cin_p, :],
                          preferred_element_type=jnp.float32)
            acc = acc + bias_ref[:, i:i + 1]
            # No post-matmul mask: next layer re-masks, wrapper strips pads.
            off = c0p + i * gp
            out_ref[off:off + gp, :] = acc.astype(out_ref.dtype)

    return kernel


def dense_block_pallas(x, params, concat_input=False, mxu_dtype=jnp.bfloat16):
    """DenseBlock forward on NHWC input x.

    Each layer: BN(eval, folded) -> ReLU -> Conv3x3(pad=1, bias=True); layer i
    sees concat(input, out_0, ..., out_{i-1}) on the channel axis.
    """
    N, H, W, C0 = x.shape
    L = len(params)
    G = params[0]["w"].shape[-1]
    f32 = jnp.float32
    mxu_np = np.dtype(mxu_dtype)

    # Channel-segment alignment: 8 sublanes for f32 MXU operands, 16 for bf16
    # (so state offsets AND bf16 im2col tap chunks are full-vreg aligned).
    chan_align = 16 if mxu_np == np.dtype(jnp.bfloat16) else 8
    c0p = _round_up(C0, chan_align)
    gp = _round_up(G, chan_align)
    cin_max_p = c0p + (L - 1) * gp
    c_state_p = c0p + L * gp

    Hp, Wp = H + 2, W + 2
    sp = Hp * Wp
    lp = _round_up(sp, 128)

    # Stack B batch elements on the lane axis per grid step (amortizes MXU
    # weight push and per-grid-step overhead; grid=(N,) gives no pipelining
    # at tiny N anyway).
    bsz = _largest_divisor_leq(N, max(1, 2048 // lp))
    steps = N // bsz
    lanes = bsz * lp

    # ---- input relayout (channel-major, flattened zero-padded spatial). ----
    # Single pad covers channel + spatial padding; under jit these relayout
    # ops fuse with the surrounding transposes/reshapes.
    xc = jnp.transpose(x, (0, 3, 1, 2)).astype(f32)                     # (N, C0, H, W)
    xc = jnp.pad(xc, ((0, 0), (0, c0p - C0), (1, 1), (1, 1)))           # (N, c0p, Hp, Wp)
    xc = xc.reshape(N, c0p, sp)
    xc = jnp.pad(xc, ((0, 0), (0, 0), (0, lp - sp)))                    # (N, c0p, lp)
    xc = xc.reshape(steps, bsz, c0p, lp).transpose(0, 2, 1, 3).reshape(steps, c0p, lanes)

    mask = jnp.pad(jnp.ones((H, W), f32), ((1, 1), (1, 1))).reshape(sp)
    mask = jnp.pad(mask, (0, lp - sp))
    mask = jnp.tile(mask, bsz).reshape(1, lanes)

    # ---- parameter packing (padded-channel layout). ----
    seg_real = [C0] + [G] * L
    seg_off_pad = np.array([0] + [c0p + i * gp for i in range(L)])
    pad_idx = np.concatenate(
        [seg_off_pad[s] + np.arange(seg_real[s]) for s in range(L + 1)]).astype(np.int32)

    scale_all = jnp.zeros((cin_max_p, L), f32)
    shift_all = jnp.zeros((cin_max_p, L), f32)
    bias_all = jnp.zeros((gp, L), f32)
    w_mats = []
    for i, p in enumerate(params):
        cin = C0 + i * G
        cin_p = c0p + i * gp
        idx = pad_idx[:cin]
        scale_all = scale_all.at[idx, i].set(p["scale"].astype(f32))
        shift_all = shift_all.at[idx, i].set(p["shift"].astype(f32))
        bias_all = bias_all.at[:G, i].set(p["b"].astype(f32))
        # HWIO (3,3,cin,G): scatter input channels to padded positions, then
        # (G, ky, kx, ci_p) -> (G, 9*cin_p); K = (ky*3+kx)*cin_p + ci_p.
        w_exp = jnp.zeros((3, 3, cin_p, G), f32).at[:, :, idx, :].set(p["w"].astype(f32))
        wmat = jnp.transpose(w_exp, (3, 0, 1, 2)).reshape(G, 9 * cin_p)
        wmat = jnp.pad(wmat, ((0, gp - G), (0, 0))).astype(mxu_dtype)
        w_mats.append(wmat)

    in_specs = [
        pl.BlockSpec((pl.Squeezed(), c0p, lanes), lambda n: (n, 0, 0)),
        pl.BlockSpec((1, lanes), lambda n: (0, 0)),
        pl.BlockSpec((cin_max_p, L), lambda n: (0, 0)),
        pl.BlockSpec((cin_max_p, L), lambda n: (0, 0)),
        pl.BlockSpec((gp, L), lambda n: (0, 0)),
    ]
    for i in range(L):
        cin_p = c0p + i * gp
        in_specs.append(pl.BlockSpec((gp, 9 * cin_p), lambda n: (0, 0)))

    # Explicit scoped-VMEM budget: state/out + input blocks (double-buffered)
    # + im2col scratch + params, with 2x headroom; clamp to v7x-safe 64 MiB.
    w_bytes = sum(int(w.size) for w in w_mats) * mxu_np.itemsize
    need = (2 * c0p * lanes * 4 + 2 * c_state_p * lanes * 4 + 2 * lanes * 4
            + 9 * cin_max_p * lanes * mxu_np.itemsize
            + 2 * w_bytes + 2 * (2 * cin_max_p * L + gp * L) * 4)
    vmem_limit = int(min(64 * 1024 * 1024, max(32 * 1024 * 1024, 2 * need)))

    kernel = _make_dense_block_kernel(L, c0p, gp, Wp, lanes, mxu_dtype)
    out_pf = pl.pallas_call(
        kernel,
        out_shape=jax.ShapeDtypeStruct((steps, c_state_p, lanes), f32),
        grid=(steps,),
        in_specs=in_specs,
        out_specs=pl.BlockSpec((pl.Squeezed(), c_state_p, lanes), lambda n: (n, 0, 0)),
        scratch_shapes=[pltpu.VMEM((9 * cin_max_p, lanes), mxu_dtype)],
        compiler_params=pltpu.CompilerParams(
            dimension_semantics=("parallel",),
            vmem_limit_bytes=vmem_limit),
    )(xc, mask, scale_all, shift_all, bias_all, *w_mats)

    # ---- output extraction: interior spatial positions, real channels, NHWC.
    out = out_pf.reshape(steps, c_state_p, bsz, lp).transpose(0, 2, 1, 3)
    out = out.reshape(N, c_state_p, lp)[:, :, :sp].reshape(N, c_state_p, Hp, Wp)
    out = out[:, :, 1:1 + H, 1:1 + W]

    ch_idx = []
    if concat_input:
        ch_idx += list(range(C0))
    for i in range(L):
        off = c0p + i * gp
        ch_idx += list(range(off, off + G))
    out = out[:, np.asarray(ch_idx, np.int32), :, :]
    return jnp.transpose(out, (0, 2, 3, 1)).astype(x.dtype)


@functools.partial(jax.jit, static_argnames=("concat_input", "mxu_dtype"))
def dense_block_forward(x, params, concat_input=False, mxu_dtype=jnp.bfloat16):
    return dense_block_pallas(x, params, concat_input=concat_input, mxu_dtype=mxu_dtype)


def init_dense_block_params(key, in_channels, growth_rate, num_layers):
    """Deterministic synthetic params for each DenseLayer (BN + Conv3x3)."""
    eps = 1e-5
    params = []
    for i in range(num_layers):
        cin = in_channels + i * growth_rate
        k = jax.random.fold_in(key, i)
        kg, kb, km, kv, kw, kbi = jax.random.split(k, 6)
        gamma = 1.0 + 0.1 * jax.random.normal(kg, (cin,), jnp.float32)
        beta = 0.1 * jax.random.normal(kb, (cin,), jnp.float32)
        mean = 0.1 * jax.random.normal(km, (cin,), jnp.float32)
        var = jax.random.uniform(kv, (cin,), jnp.float32, 0.5, 1.5)
        scale = gamma / jnp.sqrt(var + eps)           # folded BN (eval mode)
        shift = beta - mean * scale
        fan_in = 9 * cin
        w = jax.random.normal(kw, (3, 3, cin, growth_rate), jnp.float32) / np.sqrt(fan_in)
        bias = 0.1 * jax.random.normal(kbi, (growth_rate,), jnp.float32)
        params.append(dict(scale=scale, shift=shift, w=w, b=bias))
    return params


# ---------------- pure-JAX reference (for correctness check) ----------------

def _dense_layer_ref(x, scale, shift, w, b):
    y = jnp.maximum(x * scale + shift, 0.0)
    out = lax.conv_general_dilated(
        y, w, window_strides=(1, 1), padding="SAME",
        dimension_numbers=("NHWC", "HWIO", "NHWC"))
    return out + b


def dense_block_ref(x, params, concat_input=False):
    state = x
    outs = [x] if concat_input else []
    for p in params:
        out = _dense_layer_ref(state, p["scale"], p["shift"], p["w"], p["b"])
        outs.append(out)
        state = jnp.concatenate([state, out], axis=-1)
    return jnp.concatenate(outs, axis=-1)


if __name__ == "__main__":
    in_channels, growth_rate, num_layers = 4, 4, 3
    concat_input = True
    N, H, W = 2, 16, 16

    key = jax.random.PRNGKey(0)
    kx, kp = jax.random.split(key)
    x = jax.random.normal(kx, (N, H, W, in_channels), jnp.float32)
    params = init_dense_block_params(kp, in_channels, growth_rate, num_layers)

    expected_channels = growth_rate * num_layers + (in_channels if concat_input else 0)
    ref = jax.block_until_ready(dense_block_ref(x, params, concat_input=concat_input))

    # f32-MXU path: tight check against the f32 reference.
    out_f32 = jax.block_until_ready(
        dense_block_forward(x, params, concat_input=concat_input, mxu_dtype=jnp.float32))
    assert out_f32.shape == (N, H, W, expected_channels), out_f32.shape
    np.testing.assert_allclose(np.asarray(out_f32), np.asarray(ref), rtol=1e-5, atol=1e-5)

    # bf16-MXU path (default fast path on v5e/v6e/v7x): relaxed tolerance.
    out_bf16 = jax.block_until_ready(
        dense_block_forward(x, params, concat_input=concat_input, mxu_dtype=jnp.bfloat16))
    assert out_bf16.shape == (N, H, W, expected_channels), out_bf16.shape
    np.testing.assert_allclose(np.asarray(out_bf16), np.asarray(ref), rtol=5e-2, atol=5e-2)

    print("KERNEL_OK")
</pallas_src>

<mosaic_0001>
module attributes {stable_mosaic.version = 11 : i64} {
  func.func @kernel(%arg0: i32, %arg1: memref<1x8x768xf32, #tpu.memory_space<vmem>>, %arg2: memref<1x768xf32, #tpu.memory_space<vmem>>, %arg3: memref<24x3xf32, #tpu.memory_space<vmem>>, %arg4: memref<24x3xf32, #tpu.memory_space<vmem>>, %arg5: memref<8x3xf32, #tpu.memory_space<vmem>>, %arg6: memref<8x72xf32, #tpu.memory_space<vmem>>, %arg7: memref<8x144xf32, #tpu.memory_space<vmem>>, %arg8: memref<8x216xf32, #tpu.memory_space<vmem>>, %arg9: memref<1x32x768xf32, #tpu.memory_space<vmem>>, %arg10: memref<216x768xf32, #tpu.memory_space<vmem>>) attributes {dimension_semantics = [#tpu.dimension_semantics<parallel>], iteration_bounds = array<i64: 1>, scalar_prefetch = 0 : i64, scratch_operands = 1 : i64, tpu.core_type = #tpu.core_type<tc>, window_params = [{transform_indices = @transform_0, window_bounds = array<i64: 1, 8, 768>}, {pipeline_mode = #tpu.pipeline_mode<synchronous>, transform_indices = @transform_1, window_bounds = array<i64: 1, 768>}, {pipeline_mode = #tpu.pipeline_mode<synchronous>, transform_indices = @transform_2, window_bounds = array<i64: 24, 3>}, {pipeline_mode = #tpu.pipeline_mode<synchronous>, transform_indices = @transform_3, window_bounds = array<i64: 24, 3>}, {pipeline_mode = #tpu.pipeline_mode<synchronous>, transform_indices = @transform_4, window_bounds = array<i64: 8, 3>}, {pipeline_mode = #tpu.pipeline_mode<synchronous>, transform_indices = @transform_5, window_bounds = array<i64: 8, 72>}, {pipeline_mode = #tpu.pipeline_mode<synchronous>, transform_indices = @transform_6, window_bounds = array<i64: 8, 144>}, {pipeline_mode = #tpu.pipeline_mode<synchronous>, transform_indices = @transform_7, window_bounds = array<i64: 8, 216>}, {transform_indices = @transform_8, window_bounds = array<i64: 1, 32, 768>}]} {
    %c0 = arith.constant 0 : index
    %c0_0 = arith.constant 0 : index
    %0 = vector.load %arg2[%c0, %c0_0] : memref<1x768xf32, #tpu.memory_space<vmem>>, vector<1x768xf32>
    %c0_1 = arith.constant 0 : index
    %c0_2 = arith.constant 0 : index
    %c0_3 = arith.constant 0 : index
    %1 = vector.load %arg1[%c0_1, %c0_2, %c0_3] : memref<1x8x768xf32, #tpu.memory_space<vmem>>, vector<1x8x768xf32>
    %2 = vector.shape_cast %1 : vector<1x8x768xf32> to vector<8x768xf32>
    %c0_4 = arith.constant 0 : index
    %c0_5 = arith.constant 0 : index
    %c0_6 = arith.constant 0 : index
    %3 = vector.load %arg9[%c0_4, %c0_5, %c0_6] : memref<1x32x768xf32, #tpu.memory_space<vmem>>, vector<1x8x768xf32>
    %4 = vector.shape_cast %3 : vector<1x8x768xf32> to vector<8x768xf32>
    %5 = vector.shape_cast %2 : vector<8x768xf32> to vector<1x8x768xf32>
    tpu.vector_store %arg9[%c0_4, %c0_5, %c0_6], %5 {strides = array<i32>} : memref<1x32x768xf32, #tpu.memory_space<vmem>>, vector<1x8x768xf32>,
    %c0_7 = arith.constant 0 : index
    %c0_8 = arith.constant 0 : index
    %c0_9 = arith.constant 0 : index
    %6 = vector.load %arg9[%c0_7, %c0_8, %c0_9] : memref<1x32x768xf32, #tpu.memory_space<vmem>>, vector<1x8x768xf32>
    %7 = vector.shape_cast %6 : vector<1x8x768xf32> to vector<8x768xf32>
    %c0_10 = arith.constant 0 : index
    %c0_11 = arith.constant 0 : index
    %8 = vector.load %arg3[%c0_10, %c0_11] : memref<24x3xf32, #tpu.memory_space<vmem>>, vector<8x1xf32>
    %c0_12 = arith.constant 0 : index
    %c0_13 = arith.constant 0 : index
    %9 = vector.load %arg4[%c0_12, %c0_13] : memref<24x3xf32, #tpu.memory_space<vmem>>, vector<8x1xf32>
    %10 = vector.broadcast %8 : vector<8x1xf32> to vector<8x768xf32>
    %11 = arith.mulf %7, %10 : vector<8x768xf32>
    %12 = vector.broadcast %9 : vector<8x1xf32> to vector<8x768xf32>
    %13 = arith.addf %11, %12 : vector<8x768xf32>
    %cst = arith.constant 0.000000e+00 : f32
    %14 = vector.broadcast %cst : f32 to vector<8x768xf32>
    %15 = arith.maximumf %13, %14 : vector<8x768xf32>
    %16 = vector.broadcast %0 : vector<1x768xf32> to vector<8x768xf32>
    %17 = arith.mulf %15, %16 : vector<8x768xf32>
    %c19_i32 = arith.constant 19 : i32
    %18 = tpu.dynamic_rotate %17 by %c19_i32 dim 1 : vector<8x768xf32>, i32 -> vector<8x768xf32>
    %c0_14 = arith.constant 0 : index
    %c0_15 = arith.constant 0 : index
    %19 = vector.load %arg10[%c0_14, %c0_15] : memref<216x768xf32, #tpu.memory_space<vmem>>, vector<8x768xf32>
    tpu.vector_store %arg10[%c0_14, %c0_15], %18 {strides = array<i32>} : memref<216x768xf32, #tpu.memory_space<vmem>>, vector<8x768xf32>,
    %c18_i32 = arith.constant 18 : i32
    %20 = tpu.dynamic_rotate %17 by %c18_i32 dim 1 : vector<8x768xf32>, i32 -> vector<8x768xf32>
    %c8 = arith.constant 8 : index
    %c0_16 = arith.constant 0 : index
    %21 = vector.load %arg10[%c8, %c0_16] : memref<216x768xf32, #tpu.memory_space<vmem>>, vector<8x768xf32>
    tpu.vector_store %arg10[%c8, %c0_16], %20 {strides = array<i32>} : memref<216x768xf32, #tpu.memory_space<vmem>>, vector<8x768xf32>,
    %c17_i32 = arith.constant 17 : i32
    %22 = tpu.dynamic_rotate %17 by %c17_i32 dim 1 : vector<8x768xf32>, i32 -> vector<8x768xf32>
    %c16 = arith.constant 16 : index
    %c0_17 = arith.constant 0 : index
    %23 = vector.load %arg10[%c16, %c0_17] : memref<216x768xf32, #tpu.memory_space<vmem>>, vector<8x768xf32>
    tpu.vector_store %arg10[%c16, %c0_17], %22 {strides = array<i32>} : memref<216x768xf32, #tpu.memory_space<vmem>>, vector<8x768xf32>,
    %c1_i32 = arith.constant 1 : i32
    %24 = tpu.dynamic_rotate %17 by %c1_i32 dim 1 : vector<8x768xf32>, i32 -> vector<8x768xf32>
    %c24 = arith.constant 24 : index
    %c0_18 = arith.constant 0 : index
    %25 = vector.load %arg10[%c24, %c0_18] : memref<216x768xf32, #tpu.memory_space<vmem>>, vector<8x768xf32>
    tpu.vector_store %arg10[%c24, %c0_18], %24 {strides = array<i32>} : memref<216x768xf32, #tpu.memory_space<vmem>>, vector<8x768xf32>,
    %c32 = arith.constant 32 : index
    %c0_19 = arith.constant 0 : index
    %26 = vector.load %arg10[%c32, %c0_19] : memref<216x768xf32, #tpu.memory_space<vmem>>, vector<8x768xf32>
    tpu.vector_store %arg10[%c32, %c0_19], %17 {strides = array<i32>} : memref<216x768xf32, #tpu.memory_space<vmem>>, vector<8x768xf32>,
    %c767_i32 = arith.constant 767 : i32
    %27 = tpu.dynamic_rotate %17 by %c767_i32 dim 1 : vector<8x768xf32>, i32 -> vector<8x768xf32>
    %c40 = arith.constant 40 : index
    %c0_20 = arith.constant 0 : index
    %28 = vector.load %arg10[%c40, %c0_20] : memref<216x768xf32, #tpu.memory_space<vmem>>, vector<8x768xf32>
    tpu.vector_store %arg10[%c40, %c0_20], %27 {strides = array<i32>} : memref<216x768xf32, #tpu.memory_space<vmem>>, vector<8x768xf32>,
    %c751_i32 = arith.constant 751 : i32
    %29 = tpu.dynamic_rotate %17 by %c751_i32 dim 1 : vector<8x768xf32>, i32 -> vector<8x768xf32>
    %c48 = arith.constant 48 : index
    %c0_21 = arith.constant 0 : index
    %30 = vector.load %arg10[%c48, %c0_21] : memref<216x768xf32, #tpu.memory_space<vmem>>, vector<8x768xf32>
    tpu.vector_store %arg10[%c48, %c0_21], %29 {strides = array<i32>} : memref<216x768xf32, #tpu.memory_space<vmem>>, vector<8x768xf32>,
    %c750_i32 = arith.constant 750 : i32
    %31 = tpu.dynamic_rotate %17 by %c750_i32 dim 1 : vector<8x768xf32>, i32 -> vector<8x768xf32>
    %c56 = arith.constant 56 : index
    %c0_22 = arith.constant 0 : index
    %32 = vector.load %arg10[%c56, %c0_22] : memref<216x768xf32, #tpu.memory_space<vmem>>, vector<8x768xf32>
    tpu.vector_store %arg10[%c56, %c0_22], %31 {strides = array<i32>} : memref<216x768xf32, #tpu.memory_space<vmem>>, vector<8x768xf32>,
    %c749_i32 = arith.constant 749 : i32
    %33 = tpu.dynamic_rotate %17 by %c749_i32 dim 1 : vector<8x768xf32>, i32 -> vector<8x768xf32>
    %c64 = arith.constant 64 : index
    %c0_23 = arith.constant 0 : index
    %34 = vector.load %arg10[%c64, %c0_23] : memref<216x768xf32, #tpu.memory_space<vmem>>, vector<8x768xf32>
    tpu.vector_store %arg10[%c64, %c0_23], %33 {strides = array<i32>} : memref<216x768xf32, #tpu.memory_space<vmem>>, vector<8x768xf32>,
    %c0_24 = arith.constant 0 : index
    %c0_25 = arith.constant 0 : index
    %35 = vector.load %arg6[%c0_24, %c0_25] : memref<8x72xf32, #tpu.memory_space<vmem>>, vector<8x72xf32>
    %c0_26 = arith.constant 0 : index
    %c0_27 = arith.constant 0 : index
    %36 = vector.load %arg10[%c0_26, %c0_27] : memref<216x768xf32, #tpu.memory_space<vmem>>, vector<72x768xf32>
    %cst_28 = arith.constant dense<0.000000e+00> : vector<8x768xf32>
    %37 = tpu.matmul %35, %36, %cst_28 {dimension_numbers = #tpu.dot_dimension_numbers<[1], [0], [0], [1], [0, 0, 1, 1], [], []>} : vector<8x72xf32>, vector<72x768xf32>, vector<8x768xf32> -> vector<8x768xf32>
    %c0_29 = arith.constant 0 : index
    %c0_30 = arith.constant 0 : index
    %38 = vector.load %arg5[%c0_29, %c0_30] : memref<8x3xf32, #tpu.memory_space<vmem>>, vector<8x1xf32>
    %39 = vector.broadcast %38 : vector<8x1xf32> to vector<8x768xf32>
    %40 = arith.addf %37, %39 : vector<8x768xf32>
    %c0_31 = arith.constant 0 : index
    %c8_32 = arith.constant 8 : index
    %c0_33 = arith.constant 0 : index
    %41 = vector.load %arg9[%c0_31, %c8_32, %c0_33] : memref<1x32x768xf32, #tpu.memory_space<vmem>>, vector<1x8x768xf32>
    %42 = vector.shape_cast %41 : vector<1x8x768xf32> to vector<8x768xf32>
    %43 = vector.shape_cast %40 : vector<8x768xf32> to vector<1x8x768xf32>
    tpu.vector_store %arg9[%c0_31, %c8_32, %c0_33], %43 {strides = array<i32>} : memref<1x32x768xf32, #tpu.memory_space<vmem>>, vector<1x8x768xf32>,
    %c0_34 = arith.constant 0 : index
    %c0_35 = arith.constant 0 : index
    %c0_36 = arith.constant 0 : index
    %44 = vector.load %arg9[%c0_34, %c0_35, %c0_36] : memref<1x32x768xf32, #tpu.memory_space<vmem>>, vector<1x16x768xf32>
    %45 = vector.shape_cast %44 : vector<1x16x768xf32> to vector<16x768xf32>
    %c0_37 = arith.constant 0 : index
    %c1 = arith.constant 1 : index
    %46 = vector.load %arg3[%c0_37, %c1] : memref<24x3xf32, #tpu.memory_space<vmem>>, vector<16x1xf32>
    %c0_38 = arith.constant 0 : index
    %c1_39 = arith.constant 1 : index
    %47 = vector.load %arg4[%c0_38, %c1_39] : memref<24x3xf32, #tpu.memory_space<vmem>>, vector<16x1xf32>
    %48 = vector.broadcast %46 : vector<16x1xf32> to vector<16x768xf32>
    %49 = arith.mulf %45, %48 : vector<16x768xf32>
    %50 = vector.broadcast %47 : vector<16x1xf32> to vector<16x768xf32>
    %51 = arith.addf %49, %50 : vector<16x768xf32>
    %cst_40 = arith.constant 0.000000e+00 : f32
    %52 = vector.broadcast %cst_40 : f32 to vector<16x768xf32>
    %53 = arith.maximumf %51, %52 : vector<16x768xf32>
    %54 = vector.broadcast %0 : vector<1x768xf32> to vector<16x768xf32>
    %55 = arith.mulf %53, %54 : vector<16x768xf32>
    %c19_i32_41 = arith.constant 19 : i32
    %56 = tpu.dynamic_rotate %55 by %c19_i32_41 dim 1 : vector<16x768xf32>, i32 -> vector<16x768xf32>
    %c0_42 = arith.constant 0 : index
    %c0_43 = arith.constant 0 : index
    %57 = vector.load %arg10[%c0_42, %c0_43] : memref<216x768xf32, #tpu.memory_space<vmem>>, vector<16x768xf32>
    tpu.vector_store %arg10[%c0_42, %c0_43], %56 {strides = array<i32>} : memref<216x768xf32, #tpu.memory_space<vmem>>, vector<16x768xf32>,
    %c18_i32_44 = arith.constant 18 : i32
    %58 = tpu.dynamic_rotate %55 by %c18_i32_44 dim 1 : vector<16x768xf32>, i32 -> vector<16x768xf32>
    %c16_45 = arith.constant 16 : index
    %c0_46 = arith.constant 0 : index
    %59 = vector.load %arg10[%c16_45, %c0_46] : memref<216x768xf32, #tpu.memory_space<vmem>>, vector<16x768xf32>
    tpu.vector_store %arg10[%c16_45, %c0_46], %58 {strides = array<i32>} : memref<216x768xf32, #tpu.memory_space<vmem>>, vector<16x768xf32>,
    %c17_i32_47 = arith.constant 17 : i32
    %60 = tpu.dynamic_rotate %55 by %c17_i32_47 dim 1 : vector<16x768xf32>, i32 -> vector<16x768xf32>
    %c32_48 = arith.constant 32 : index
    %c0_49 = arith.constant 0 : index
    %61 = vector.load %arg10[%c32_48, %c0_49] : memref<216x768xf32, #tpu.memory_space<vmem>>, vector<16x768xf32>
    tpu.vector_store %arg10[%c32_48, %c0_49], %60 {strides = array<i32>} : memref<216x768xf32, #tpu.memory_space<vmem>>, vector<16x768xf32>,
    %c1_i32_50 = arith.constant 1 : i32
    %62 = tpu.dynamic_rotate %55 by %c1_i32_50 dim 1 : vector<16x768xf32>, i32 -> vector<16x768xf32>
    %c48_51 = arith.constant 48 : index
    %c0_52 = arith.constant 0 : index
    %63 = vector.load %arg10[%c48_51, %c0_52] : memref<216x768xf32, #tpu.memory_space<vmem>>, vector<16x768xf32>
    tpu.vector_store %arg10[%c48_51, %c0_52], %62 {strides = array<i32>} : memref<216x768xf32, #tpu.memory_space<vmem>>, vector<16x768xf32>,
    %c64_53 = arith.constant 64 : index
    %c0_54 = arith.constant 0 : index
    %64 = vector.load %arg10[%c64_53, %c0_54] : memref<216x768xf32, #tpu.memory_space<vmem>>, vector<16x768xf32>
    tpu.vector_store %arg10[%c64_53, %c0_54], %55 {strides = array<i32>} : memref<216x768xf32, #tpu.memory_space<vmem>>, vector<16x768xf32>,
    %c767_i32_55 = arith.constant 767 : i32
    %65 = tpu.dynamic_rotate %55 by %c767_i32_55 dim 1 : vector<16x768xf32>, i32 -> vector<16x768xf32>
    %c80 = arith.constant 80 : index
    %c0_56 = arith.constant 0 : index
    %66 = vector.load %arg10[%c80, %c0_56] : memref<216x768xf32, #tpu.memory_space<vmem>>, vector<16x768xf32>
    tpu.vector_store %arg10[%c80, %c0_56], %65 {strides = array<i32>} : memref<216x768xf32, #tpu.memory_space<vmem>>, vector<16x768xf32>,
    %c751_i32_57 = arith.constant 751 : i32
    %67 = tpu.dynamic_rotate %55 by %c751_i32_57 dim 1 : vector<16x768xf32>, i32 -> vector<16x768xf32>
    %c96 = arith.constant 96 : index
    %c0_58 = arith.constant 0 : index
    %68 = vector.load %arg10[%c96, %c0_58] : memref<216x768xf32, #tpu.memory_space<vmem>>, vector<16x768xf32>
    tpu.vector_store %arg10[%c96, %c0_58], %67 {strides = array<i32>} : memref<216x768xf32, #tpu.memory_space<vmem>>, vector<16x768xf32>,
    %c750_i32_59 = arith.constant 750 : i32
    %69 = tpu.dynamic_rotate %55 by %c750_i32_59 dim 1 : vector<16x768xf32>, i32 -> vector<16x768xf32>
    %c112 = arith.constant 112 : index
    %c0_60 = arith.constant 0 : index
    %70 = vector.load %arg10[%c112, %c0_60] : memref<216x768xf32, #tpu.memory_space<vmem>>, vector<16x768xf32>
    tpu.vector_store %arg10[%c112, %c0_60], %69 {strides = array<i32>} : memref<216x768xf32, #tpu.memory_space<vmem>>, vector<16x768xf32>,
    %c749_i32_61 = arith.constant 749 : i32
    %71 = tpu.dynamic_rotate %55 by %c749_i32_61 dim 1 : vector<16x768xf32>, i32 -> vector<16x768xf32>
    %c128 = arith.constant 128 : index
    %c0_62 = arith.constant 0 : index
    %72 = vector.load %arg10[%c128, %c0_62] : memref<216x768xf32, #tpu.memory_space<vmem>>, vector<16x768xf32>
    tpu.vector_store %arg10[%c128, %c0_62], %71 {strides = array<i32>} : memref<216x768xf32, #tpu.memory_space<vmem>>, vector<16x768xf32>,
    %c0_63 = arith.constant 0 : index
    %c0_64 = arith.constant 0 : index
    %73 = vector.load %arg7[%c0_63, %c0_64] : memref<8x144xf32, #tpu.memory_space<vmem>>, vector<8x144xf32>
    %c0_65 = arith.constant 0 : index
    %c0_66 = arith.constant 0 : index
    %74 = vector.load %arg10[%c0_65, %c0_66] : memref<216x768xf32, #tpu.memory_space<vmem>>, vector<144x768xf32>
    %cst_67 = arith.constant dense<0.000000e+00> : vector<8x768xf32>
    %75 = tpu.matmul %73, %74, %cst_67 {dimension_numbers = #tpu.dot_dimension_numbers<[1], [0], [0], [1], [0, 0, 1, 1], [], []>} : vector<8x144xf32>, vector<144x768xf32>, vector<8x768xf32> -> vector<8x768xf32>
    %c0_68 = arith.constant 0 : index
    %c1_69 = arith.constant 1 : index
    %76 = vector.load %arg5[%c0_68, %c1_69] : memref<8x3xf32, #tpu.memory_space<vmem>>, vector<8x1xf32>
    %77 = vector.broadcast %76 : vector<8x1xf32> to vector<8x768xf32>
    %78 = arith.addf %75, %77 : vector<8x768xf32>
    %c0_70 = arith.constant 0 : index
    %c16_71 = arith.constant 16 : index
    %c0_72 = arith.constant 0 : index
    %79 = vector.load %arg9[%c0_70, %c16_71, %c0_72] : memref<1x32x768xf32, #tpu.memory_space<vmem>>, vector<1x8x768xf32>
    %80 = vector.shape_cast %79 : vector<1x8x768xf32> to vector<8x768xf32>
    %81 = vector.shape_cast %78 : vector<8x768xf32> to vector<1x8x768xf32>
    tpu.vector_store %arg9[%c0_70, %c16_71, %c0_72], %81 {strides = array<i32>} : memref<1x32x768xf32, #tpu.memory_space<vmem>>, vector<1x8x768xf32>,
    %c0_73 = arith.constant 0 : index
    %c0_74 = arith.constant 0 : index
    %c0_75 = arith.constant 0 : index
    %82 = vector.load %arg9[%c0_73, %c0_74, %c0_75] : memref<1x32x768xf32, #tpu.memory_space<vmem>>, vector<1x24x768xf32>
    %83 = vector.shape_cast %82 : vector<1x24x768xf32> to vector<24x768xf32>
    %c0_76 = arith.constant 0 : index
    %c2 = arith.constant 2 : index
    %84 = vector.load %arg3[%c0_76, %c2] : memref<24x3xf32, #tpu.memory_space<vmem>>, vector<24x1xf32>
    %c0_77 = arith.constant 0 : index
    %c2_78 = arith.constant 2 : index
    %85 = vector.load %arg4[%c0_77, %c2_78] : memref<24x3xf32, #tpu.memory_space<vmem>>, vector<24x1xf32>
    %86 = vector.broadcast %84 : vector<24x1xf32> to vector<24x768xf32>
    %87 = arith.mulf %83, %86 : vector<24x768xf32>
    %88 = vector.broadcast %85 : vector<24x1xf32> to vector<24x768xf32>
    %89 = arith.addf %87, %88 : vector<24x768xf32>
    %cst_79 = arith.constant 0.000000e+00 : f32
    %90 = vector.broadcast %cst_79 : f32 to vector<24x768xf32>
    %91 = arith.maximumf %89, %90 : vector<24x768xf32>
    %92 = vector.broadcast %0 : vector<1x768xf32> to vector<24x768xf32>
    %93 = arith.mulf %91, %92 : vector<24x768xf32>
    %c19_i32_80 = arith.constant 19 : i32
    %94 = tpu.dynamic_rotate %93 by %c19_i32_80 dim 1 : vector<24x768xf32>, i32 -> vector<24x768xf32>
    %c0_81 = arith.constant 0 : index
    %c0_82 = arith.constant 0 : index
    %95 = vector.load %arg10[%c0_81, %c0_82] : memref<216x768xf32, #tpu.memory_space<vmem>>, vector<24x768xf32>
    tpu.vector_store %arg10[%c0_81, %c0_82], %94 {strides = array<i32>} : memref<216x768xf32, #tpu.memory_space<vmem>>, vector<24x768xf32>,
    %c18_i32_83 = arith.constant 18 : i32
    %96 = tpu.dynamic_rotate %93 by %c18_i32_83 dim 1 : vector<24x768xf32>, i32 -> vector<24x768xf32>
    %c24_84 = arith.constant 24 : index
    %c0_85 = arith.constant 0 : index
    %97 = vector.load %arg10[%c24_84, %c0_85] : memref<216x768xf32, #tpu.memory_space<vmem>>, vector<24x768xf32>
    tpu.vector_store %arg10[%c24_84, %c0_85], %96 {strides = array<i32>} : memref<216x768xf32, #tpu.memory_space<vmem>>, vector<24x768xf32>,
    %c17_i32_86 = arith.constant 17 : i32
    %98 = tpu.dynamic_rotate %93 by %c17_i32_86 dim 1 : vector<24x768xf32>, i32 -> vector<24x768xf32>
    %c48_87 = arith.constant 48 : index
    %c0_88 = arith.constant 0 : index
    %99 = vector.load %arg10[%c48_87, %c0_88] : memref<216x768xf32, #tpu.memory_space<vmem>>, vector<24x768xf32>
    tpu.vector_store %arg10[%c48_87, %c0_88], %98 {strides = array<i32>} : memref<216x768xf32, #tpu.memory_space<vmem>>, vector<24x768xf32>,
    %c1_i32_89 = arith.constant 1 : i32
    %100 = tpu.dynamic_rotate %93 by %c1_i32_89 dim 1 : vector<24x768xf32>, i32 -> vector<24x768xf32>
    %c72 = arith.constant 72 : index
    %c0_90 = arith.constant 0 : index
    %101 = vector.load %arg10[%c72, %c0_90] : memref<216x768xf32, #tpu.memory_space<vmem>>, vector<24x768xf32>
    tpu.vector_store %arg10[%c72, %c0_90], %100 {strides = array<i32>} : memref<216x768xf32, #tpu.memory_space<vmem>>, vector<24x768xf32>,
    %c96_91 = arith.constant 96 : index
    %c0_92 = arith.constant 0 : index
    %102 = vector.load %arg10[%c96_91, %c0_92] : memref<216x768xf32, #tpu.memory_space<vmem>>, vector<24x768xf32>
    tpu.vector_store %arg10[%c96_91, %c0_92], %93 {strides = array<i32>} : memref<216x768xf32, #tpu.memory_space<vmem>>, vector<24x768xf32>,
    %c767_i32_93 = arith.constant 767 : i32
    %103 = tpu.dynamic_rotate %93 by %c767_i32_93 dim 1 : vector<24x768xf32>, i32 -> vector<24x768xf32>
    %c120 = arith.constant 120 : index
    %c0_94 = arith.constant 0 : index
    %104 = vector.load %arg10[%c120, %c0_94] : memref<216x768xf32, #tpu.memory_space<vmem>>, vector<24x768xf32>
    tpu.vector_store %arg10[%c120, %c0_94], %103 {strides = array<i32>} : memref<216x768xf32, #tpu.memory_space<vmem>>, vector<24x768xf32>,
    %c751_i32_95 = arith.constant 751 : i32
    %105 = tpu.dynamic_rotate %93 by %c751_i32_95 dim 1 : vector<24x768xf32>, i32 -> vector<24x768xf32>
    %c144 = arith.constant 144 : index
    %c0_96 = arith.constant 0 : index
    %106 = vector.load %arg10[%c144, %c0_96] : memref<216x768xf32, #tpu.memory_space<vmem>>, vector<24x768xf32>
    tpu.vector_store %arg10[%c144, %c0_96], %105 {strides = array<i32>} : memref<216x768xf32, #tpu.memory_space<vmem>>, vector<24x768xf32>,
    %c750_i32_97 = arith.constant 750 : i32
    %107 = tpu.dynamic_rotate %93 by %c750_i32_97 dim 1 : vector<24x768xf32>, i32 -> vector<24x768xf32>
    %c168 = arith.constant 168 : index
    %c0_98 = arith.constant 0 : index
    %108 = vector.load %arg10[%c168, %c0_98] : memref<216x768xf32, #tpu.memory_space<vmem>>, vector<24x768xf32>
    tpu.vector_store %arg10[%c168, %c0_98], %107 {strides = array<i32>} : memref<216x768xf32, #tpu.memory_space<vmem>>, vector<24x768xf32>,
    %c749_i32_99 = arith.constant 749 : i32
    %109 = tpu.dynamic_rotate %93 by %c749_i32_99 dim 1 : vector<24x768xf32>, i32 -> vector<24x768xf32>
    %c192 = arith.constant 192 : index
    %c0_100 = arith.constant 0 : index
    %110 = vector.load %arg10[%c192, %c0_100] : memref<216x768xf32, #tpu.memory_space<vmem>>, vector<24x768xf32>
    tpu.vector_store %arg10[%c192, %c0_100], %109 {strides = array<i32>} : memref<216x768xf32, #tpu.memory_space<vmem>>, vector<24x768xf32>,
    %c0_101 = arith.constant 0 : index
    %c0_102 = arith.constant 0 : index
    %111 = vector.load %arg8[%c0_101, %c0_102] : memref<8x216xf32, #tpu.memory_space<vmem>>, vector<8x216xf32>
    %c0_103 = arith.constant 0 : index
    %c0_104 = arith.constant 0 : index
    %112 = vector.load %arg10[%c0_103, %c0_104] : memref<216x768xf32, #tpu.memory_space<vmem>>, vector<216x768xf32>
    %cst_105 = arith.constant dense<0.000000e+00> : vector<8x768xf32>
    %113 = tpu.matmul %111, %112, %cst_105 {dimension_numbers = #tpu.dot_dimension_numbers<[1], [0], [0], [1], [0, 0, 1, 1], [], []>} : vector<8x216xf32>, vector<216x768xf32>, vector<8x768xf32> -> vector<8x768xf32>
    %c0_106 = arith.constant 0 : index
    %c2_107 = arith.constant 2 : index
    %114 = vector.load %arg5[%c0_106, %c2_107] : memref<8x3xf32, #tpu.memory_space<vmem>>, vector<8x1xf32>
    %115 = vector.broadcast %114 : vector<8x1xf32> to vector<8x768xf32>
    %116 = arith.addf %113, %115 : vector<8x768xf32>
    %c0_108 = arith.constant 0 : index
    %c24_109 = arith.constant 24 : index
    %c0_110 = arith.constant 0 : index
    %117 = vector.load %arg9[%c0_108, %c24_109, %c0_110] : memref<1x32x768xf32, #tpu.memory_space<vmem>>, vector<1x8x768xf32>
    %118 = vector.shape_cast %117 : vector<1x8x768xf32> to vector<8x768xf32>
    %119 = vector.shape_cast %116 : vector<8x768xf32> to vector<1x8x768xf32>
    tpu.vector_store %arg9[%c0_108, %c24_109, %c0_110], %119 {strides = array<i32>} : memref<1x32x768xf32, #tpu.memory_space<vmem>>, vector<1x8x768xf32>,
    return
  }
  func.func @transform_0(%arg0: i32) -> (i32, i32, i32) {
    %c0_i32 = arith.constant 0 : i32
    %c0_i32_0 = arith.constant 0 : i32
    %c0_i32_1 = arith.constant 0 : i32
    return %arg0, %c0_i32, %c0_i32_0 : i32, i32, i32
  }
  func.func @transform_1(%arg0: i32) -> (i32, i32) {
    %c0_i32 = arith.constant 0 : i32
    %c0_i32_0 = arith.constant 0 : i32
    %c0_i32_1 = arith.constant 0 : i32
    return %c0_i32, %c0_i32_0 : i32, i32
  }
  func.func @transform_2(%arg0: i32) -> (i32, i32) {
    %c0_i32 = arith.constant 0 : i32
    %c0_i32_0 = arith.constant 0 : i32
    %c0_i32_1 = arith.constant 0 : i32
    return %c0_i32, %c0_i32_0 : i32, i32
  }
  func.func @transform_3(%arg0: i32) -> (i32, i32) {
    %c0_i32 = arith.constant 0 : i32
    %c0_i32_0 = arith.constant 0 : i32
    %c0_i32_1 = arith.constant 0 : i32
    return %c0_i32, %c0_i32_0 : i32, i32
  }
  func.func @transform_4(%arg0: i32) -> (i32, i32) {
    %c0_i32 = arith.constant 0 : i32
    %c0_i32_0 = arith.constant 0 : i32
    %c0_i32_1 = arith.constant 0 : i32
    return %c0_i32, %c0_i32_0 : i32, i32
  }
  func.func @transform_5(%arg0: i32) -> (i32, i32) {
    %c0_i32 = arith.constant 0 : i32
    %c0_i32_0 = arith.constant 0 : i32
    %c0_i32_1 = arith.constant 0 : i32
    return %c0_i32, %c0_i32_0 : i32, i32
  }
  func.func @transform_6(%arg0: i32) -> (i32, i32) {
    %c0_i32 = arith.constant 0 : i32
    %c0_i32_0 = arith.constant 0 : i32
    %c0_i32_1 = arith.constant 0 : i32
    return %c0_i32, %c0_i32_0 : i32, i32
  }
  func.func @transform_7(%arg0: i32) -> (i32, i32) {
    %c0_i32 = arith.constant 0 : i32
    %c0_i32_0 = arith.constant 0 : i32
    %c0_i32_1 = arith.constant 0 : i32
    return %c0_i32, %c0_i32_0 : i32, i32
  }
  func.func @transform_8(%arg0: i32) -> (i32, i32, i32) {
    %c0_i32 = arith.constant 0 : i32
    %c0_i32_0 = arith.constant 0 : i32
    %c0_i32_1 = arith.constant 0 : i32
    return %arg0, %c0_i32, %c0_i32_0 : i32, i32, i32
  }
}

</mosaic_0001>

<bundles_post_ra>
// kernel: dense_block_forward.1
= control target key start
LH: loop header
LB: loop body
LE: loop exit
PB: predicated region body
PF: predicated region fallthrough
CT: control target
= control target key end

     0   :  { %v3521_v0 = vmov 0   ;;  %v79_v9 = vlaneseq  ;;  %s3523_s12 = smov 18   ;;  %s3524_s13 = smov 17   ;;  %v3529_v54 = vmov 0.0   ;;  %v3531_v56 = vmov 1   ;;  %s5860_s2 = inlined_call_operand.vmem [shape: f32[24,3], index: 2, kind: input, shape index: {}]   ;;  %s5861_s3 = inlined_call_operand.vmem [shape: f32[24,3], index: 3, kind: input, shape index: {}]   ;;  %s5862_s0 = inlined_call_operand.vmem [shape: f32[1,8,768], index: 0, kind: input, shape index: {}]   ;;  %s5863_s8 = inlined_call_operand.vmem [shape: f32[1,32,768], index: 8, kind: output, shape index: {}]   ;;  %s5864_s1 = inlined_call_operand.vmem [shape: f32[1,768], index: 1, kind: input, shape index: {}]   ;;  %s5865_s4 = inlined_call_operand.vmem [shape: f32[8,3], index: 4, kind: input, shape index: {}]   ;;  %s5866_s5 = inlined_call_operand.vmem [shape: f32[8,72], index: 5, kind: input, shape index: {}]   ;;  %s5867_s6 = inlined_call_operand.vmem [shape: f32[8,144], index: 6, kind: input, shape index: {}]   ;;  %s5868_s7 = inlined_call_operand.vmem [shape: f32[8,216], index: 7, kind: input, shape index: {}]  }
   0x1   :  { %2876 = vset.pattern.permute.xlu0 %v3521_v0  ;;  %v3581_v1 = vld [vmem:[%s5860_s2] sm:$0xff]  ;;  %v3592_v3 = vld [vmem:[%s5862_s0 + $0x8] sm:$0xff]  ;;  %v3597_v4 = vld [vmem:[%s5862_s0 + $0x10] sm:$0xff]  ;;  %s3525_s14 = smov 1   ;;  %s3526_s15 = smov 127   ;;  %452 = vmatprep.mubr.f32.mxu1 %v3529_v54  ;;  %vm384_vm8 = vcmask 588800  }
   0x2   :  { %v3586_v2 = vld [vmem:[%s5862_s0] sm:$0xff]  ;;  %52 = vperm.xlu0 %2876, %v3581_v1   ;;  %v3602_v5 = vld [vmem:[%s5862_s0 + $0x18] sm:$0xff]  ;;  %v3621_v8 = vld [vmem:[%s5862_s0 + $0x28] sm:$0xff]  ;;  %37 = vst [vmem:[%s5863_s8 + $0x8] sm:$0xff] %v3592_v3  ;;  %v80_v10 = vshrl.u32 %v79_v9, 7  ;;  %s3527_s16 = smov 110   ;;  %594 = vmatprep.mubr.f32.mxu0 %v3529_v54 }
   0x3   :  { %36 = vst [vmem:[%s5863_s8] sm:$0xff] %v3586_v2  ;;  %v3611_v6 = vld [vmem:[%s5861_s3] sm:$0xff]  ;;  %38 = vst [vmem:[%s5863_s8 + $0x10] sm:$0xff] %v3597_v4  ;;  %s3528_s17 = smov 111   ;;  %s3530_s18 = smov 109   ;;  %2947 = vset.pattern.permute.xlu1 %v3531_v56  ;;  %v3755_v57 = vld [vmem:[%s5860_s2 + $0x8] sm:$0xff]  ;;  %v3769_v59 = vand.u32 127, %v79_v9 }
   0x4   :  { %v3616_v7 = vld [vmem:[%s5862_s0 + $0x20] sm:$0xff]  ;;  %39 = vst [vmem:[%s5863_s8 + $0x18] sm:$0xff] %v3602_v5  ;;  %41 = vst [vmem:[%s5863_s8 + $0x28] sm:$0xff] %v3621_v8  ;;  %v81_v12 = vsub.s32 0, %v80_v10  ;;  %v85_v13 = vsub.s32 1, %v80_v10  ;;  %v97_v14 = vsub.s32 4, %v80_v10 }
   0x5   :  { %40 = vst [vmem:[%s5863_s8 + $0x20] sm:$0xff] %v3616_v7  ;;  %v29_v15 = vld [vmem:[%s5864_s1] sm:$0x3f]  ;;  %v101_v16 = vsub.s32 5, %v80_v10  ;;  %v93_v33 = vsub.s32 3, %v80_v10  ;;  %s3522_s1 = smov 19  }
   0x6   :  { %63 = vperm.xlu0 %2876, %v3611_v6   ;;  %v3652_v22 = vrot.slane %v29_v15, %v81_v12  ;;  %v3654_v25 = vrot.slane %v29_v15, %v85_v13  ;;  %v3656_v26 = vrot.slane %v29_v15, %v97_v14  ;;  %v89_v47 = vsub.s32 2, %v80_v10  ;;  %v3747_v55 = vld [vmem:[%s5865_s4] sm:$0xff]  ;;  %v3765_v58 = vld [vmem:[%s5861_s3 + $0x8] sm:$0xff] }
   0x7   :  { %v3659_v30 = vrot.slane %v29_v15, %v101_v16  ;;  %v3675_v43 = vrot.slane %v29_v15, %v93_v33  ;;  %vm129_vm0 = vcmp.lt.s32.totalorder %v3769_v59, 19  ;;  %vm154_vm1 = vcmp.lt.s32.totalorder %v3769_v59, 18 }
   0x8   :  { %v3690_v50 = vrot.slane %v29_v15, %v89_v47  ;;  %vm179_vm2 = vcmp.lt.s32.totalorder %v3769_v59, 17  ;;  %vm204_vm3 = vcmp.lt.s32.totalorder %v3769_v59, 1  ;;  %vm235_vm4 = vcmp.lt.s32.totalorder %v3769_v59, 127 }
   0x9   :  { %vm260_vm5 = vcmp.lt.s32.totalorder %v3769_v59, 111  ;;  %vm285_vm6 = vcmp.lt.s32.totalorder %v3769_v59, 110  ;;  %vm310_vm7 = vcmp.lt.s32.totalorder %v3769_v59, 109  ;;  %vm1203_vm9 = vcmask 130048  }
   0xa   :  { %vm2316_vm10 = vcmask 719872  }
  0x81   :  { %v53_v11 = vpop.permute.xlu0 %52 }
  0x82   :  { %v55_v17 = vmul.f32 %v53_v11, %v3586_v2  ;;  %v56_v18 = vmul.f32 %v53_v11, %v3592_v3  ;;  %v59_v19 = vmul.f32 %v53_v11, %v3616_v7  ;;  %v60_v20 = vmul.f32 %v53_v11, %v3621_v8 }
  0x83   :  { %v58_v27 = vmul.f32 %v53_v11, %v3602_v5  ;;  %v57_v46 = vmul.f32 %v53_v11, %v3597_v4 }
  0x85   :  { %v64_v21 = vpop.permute.xlu0 %63 }
  0x86   :  { %v66_v23 = vadd.f32 %v64_v21, %v55_v17  ;;  %v67_v24 = vadd.f32 %v64_v21, %v56_v18  ;;  %v70_v28 = vadd.f32 %v64_v21, %v59_v19  ;;  %v71_v29 = vadd.f32 %v64_v21, %v60_v20 }
  0x87   :  { %v69_v34 = vadd.f32 %v64_v21, %v58_v27  ;;  %v68_v48 = vadd.f32 %v64_v21, %v57_v46 }
  0x88   :  { %v72_v31 = vmax.f32 %v66_v23, 0.0  ;;  %v73_v32 = vmax.f32 %v67_v24, 0.0  ;;  %v76_v35 = vmax.f32 %v70_v28, 0.0  ;;  %v77_v36 = vmax.f32 %v71_v29, 0.0 }
  0x89   :  { %v75_v42 = vmax.f32 %v69_v34, 0.0  ;;  %v74_v49 = vmax.f32 %v68_v48, 0.0 }
  0x8a   :  { %v3662_v37 = vmul.f32 %v3652_v22, %v72_v31  ;;  %v3665_v38 = vmul.f32 %v3654_v25, %v73_v32  ;;  %v3668_v39 = vmul.f32 %v3656_v26, %v76_v35  ;;  %v3671_v40 = vmul.f32 %v3659_v30, %v77_v36 }
  0x8b   :  { %v3682_v45 = vmul.f32 %v3675_v43, %v75_v42  ;;  %v3696_v51 = vmul.f32 %v3690_v50, %v74_v49 }
  0x8c   :  { %v2877_v41 = vpack.i.bf16 %v3665_v38, %v3662_v37  ;;  %v2887_v44 = vpack.i.bf16 %v3671_v40, %v3668_v39  ;;  %v2922_v53 = vpack.i.bf16 %v3671_v40, %v3662_v37 }
  0x8d   :  { %v2917_v52 = vpack.i.bf16 %v3696_v51, %v3665_v38 }
  0x8e   :  { %2878 = vrot.lane.b32.xlu1 %v2877_v41, %s3522_s1  ;;  %2888 = vrot.lane.b32.xlu0 %v2887_v44, %s3522_s1 }
  0x92   :  { %2883 = vrot.lane.b32.xlu1 %v2877_v41, %s3523_s12  ;;  %121 = vrot.lane.b32.xlu0 %v3682_v45, %s3522_s1 }
  0x96   :  { %2893 = vrot.lane.b32.xlu1 %v2887_v44, %s3523_s12  ;;  %2898 = vrot.lane.b32.xlu0 %v2877_v41, %s3524_s13 }
  0x9a   :  { %148 = vrot.lane.b32.xlu1 %v3682_v45, %s3523_s12  ;;  %2908 = vrot.lane.b32.xlu0 %v2887_v44, %s3524_s13 }
  0x9e   :  { %2903 = vrot.lane.b32.xlu1 %v2877_v41, %s3525_s14  ;;  %173 = vrot.lane.b32.xlu0 %v3682_v45, %s3524_s13 }
  0xa2   :  { %2913 = vrot.lane.b32.xlu1 %v2887_v44, %s3525_s14  ;;  %2918 = vrot.lane.b32.xlu0 %v2917_v52, %s3526_s15 }
  0xa6   :  { %198 = vrot.lane.b32.xlu1 %v3682_v45, %s3525_s14  ;;  %231 = vrot.lane.b32.xlu0 %v3668_v39, %s3526_s15 }
  0xaa   :  { %2923 = vrot.lane.b32.xlu1 %v2922_v53, %s3526_s15  ;;  %2933 = vrot.lane.b32.xlu0 %v2917_v52, %s3527_s16 }
  0xae   :  { %2928 = vrot.lane.b32.xlu1 %v2917_v52, %s3528_s17  ;;  %2943 = vrot.lane.b32.xlu0 %v2922_v53, %s3527_s16 }
  0xb2   :  { %2938 = vrot.lane.b32.xlu1 %v2922_v53, %s3528_s17  ;;  %281 = vrot.lane.b32.xlu0 %v3668_v39, %s3527_s16 }
  0xb6   :  { %256 = vrot.lane.b32.xlu1 %v3668_v39, %s3528_s17  ;;  %302 = vrot.lane.b32.xlu0 %v3696_v51, %s3530_s18 }
  0xba   :  { %300 = vrot.lane.b32.xlu1 %v3665_v38, %s3530_s18  ;;  %308 = vrot.lane.b32.xlu0 %v3671_v40, %s3530_s18 }
  0xbe   :  { %298 = vrot.lane.b32.xlu1 %v3662_v37, %s3530_s18  ;;  %119 = vrot.lane.b32.xlu0 %v3696_v51, %s3522_s1 }
  0xc2   :  { %306 = vrot.lane.b32.xlu1 %v3668_v39, %s3530_s18  ;;  %171 = vrot.lane.b32.xlu0 %v3696_v51, %s3524_s13 }
  0xc6   :  { %146 = vrot.lane.b32.xlu1 %v3696_v51, %s3523_s12  ;;  %229 = vrot.lane.b32.xlu0 %v3682_v45, %s3526_s15 }
  0xca   :  { %196 = vrot.lane.b32.xlu1 %v3696_v51, %s3525_s14  ;;  %279 = vrot.lane.b32.xlu0 %v3682_v45, %s3527_s16 }
  0xce   :  { %254 = vrot.lane.b32.xlu1 %v3682_v45, %s3528_s17  ;;  %381 = vperm.xlu0 %2876, %v3747_v55  }
  0xd2   :  { %304 = vrot.lane.b32.xlu1 %v3682_v45, %s3530_s18  ;;  %2948 = vset.pattern.permute.xlu0 %v3531_v56 }
  0xd3   :  { %630 = vperm.xlu0 %2948, %v3755_v57  }
  0xd6   :  { %625 = vperm.xlu1 %2947, %v3581_v1  }
  0xda   :  { %647 = vperm.xlu1 %2947, %v3611_v6  }
  0xde   :  { %652 = vperm.xlu1 %2947, %v3765_v58  }
 0x100   :  { %v3771_v60 = vpop.permute.xlu1 %2878  ;;  %v2889_v61 = vpop.permute.xlu0 %2888 }
 0x101   :  { %v2881_v62 = vunpack.i.h.bf16 %v3771_v60  ;;  %v2880_v63 = vunpack.i.l.bf16 %v3771_v60  ;;  %v2891_v12 = vunpack.i.h.bf16 %v2889_v61  ;;  %v2890_v13 = vunpack.i.l.bf16 %v2889_v61 }
 0x103   :  { %v134_v14 = vsel %vm129_vm0, %v2880_v63, %v2881_v62  ;;  %v135_v21 = vsel %vm129_vm0, %v2891_v12, %v2880_v63  ;;  %v130_v24 = vsel %vm129_vm0, %v2890_v13, %v2891_v12 }
 0x104   :  { %v3777_v0 = vpop.permute.xlu1 %2883  ;;  %v3779_v10 = vpop.permute.xlu0 %121 }
 0x105   :  { %v2886_v11 = vunpack.i.h.bf16 %v3777_v0  ;;  %v2885_v9 = vunpack.i.l.bf16 %v3777_v0  ;;  %v131_v33 = vsel %vm129_vm0, %v3779_v10, %v2890_v13 }
 0x107   :  { %v159_v15 = vsel %vm154_vm1, %v2885_v9, %v2886_v11 }
 0x108   :  { %v2894_v16 = vpop.permute.xlu1 %2893  ;;  %v2552_v17 = vpack.c.bf16 %v159_v15, %v134_v14  ;;  %v3791_v18 = vpop.permute.xlu0 %2898 }
 0x109   :  { %v2896_v19 = vunpack.i.h.bf16 %v2894_v16  ;;  %v2895_v20 = vunpack.i.l.bf16 %v2894_v16  ;;  %v2901_v36 = vunpack.i.h.bf16 %v3791_v18  ;;  %v2900_v41 = vunpack.i.l.bf16 %v3791_v18 }
 0x10a   :  { %2553 = vmatprep.subr.bf16.mxu1 %v2552_v17 }
 0x10b   :  { %v160_v23 = vsel %vm154_vm1, %v2896_v19, %v2885_v9  ;;  %v155_v27 = vsel %vm154_vm1, %v2895_v20, %v2896_v19  ;;  %v184_v52 = vsel %vm179_vm2, %v2900_v41, %v2901_v36 }
 0x10c   :  { %v3801_v28 = vpop.permute.xlu1 %148  ;;  %v2554_v29 = vpack.c.bf16 %v160_v23, %v135_v21  ;;  %v2584_v31 = vpack.c.bf16 %v155_v27, %v130_v24  ;;  %v2909_v32 = vpop.permute.xlu0 %2908 }
 0x10d   :  { %v156_v34 = vsel %vm154_vm1, %v3801_v28, %v2895_v20  ;;  %v2911_v48 = vunpack.i.h.bf16 %v2909_v32  ;;  %v2910_v49 = vunpack.i.l.bf16 %v2909_v32 }
 0x10e   :  { %2555 = vmatpush1.bf16.msra.mxu1 %v2554_v29  ;;  %2585 = vmatprep.subr.bf16.mxu0 %v2584_v31  ;;  %v2586_v35 = vpack.c.bf16 %v156_v34, %v131_v33 }
 0x10f   :  { %v185_v15 = vsel %vm179_vm2, %v2911_v48, %v2900_v41  ;;  %v180_v17 = vsel %vm179_vm2, %v2910_v49, %v2911_v48 }
 0x110   :  { %v3813_v42 = vpop.permute.xlu1 %2903  ;;  %2587 = vmatpush1.bf16.msra.mxu0 %v2586_v35  ;;  %v3815_v44 = vpop.permute.xlu0 %173 }
 0x111   :  { %v2906_v46 = vunpack.i.h.bf16 %v3813_v42  ;;  %v2905_v47 = vunpack.i.l.bf16 %v3813_v42  ;;  %v181_v27 = vsel %vm179_vm2, %v3815_v44, %v2910_v49 }
 0x113   :  { %v209_v53 = vsel %vm204_vm3, %v2905_v47, %v2906_v46 }
 0x114   :  { %v2914_v56 = vpop.permute.xlu1 %2913  ;;  %v2556_v61 = vpack.c.bf16 %v209_v53, %v184_v52  ;;  %v3828_v63 = vpop.permute.xlu0 %2918 }
 0x115   :  { %v2916_v9 = vunpack.i.h.bf16 %v2914_v56  ;;  %v2915_v12 = vunpack.i.l.bf16 %v2914_v56  ;;  %v2921_v13 = vunpack.i.h.bf16 %v3828_v63  ;;  %v2920_v14 = vunpack.i.l.bf16 %v3828_v63 }
 0x116   :  { %2557 = vmatprep.subr.bf16.mxu1 %v2556_v61 }
 0x117   :  { %v210_v16 = vsel %vm204_vm3, %v2916_v9, %v2905_v47  ;;  %v205_v19 = vsel %vm204_vm3, %v2915_v12, %v2916_v9  ;;  %v239_v24 = vsel %vm235_vm4, %v2920_v14, %v2921_v13 }
 0x118   :  { %v3840_v20 = vpop.permute.xlu1 %198  ;;  %v2558_v21 = vpack.c.bf16 %v210_v16, %v185_v15  ;;  %v2588_v23 = vpack.c.bf16 %v205_v19, %v180_v17  ;;  %v3849_v29 = vpop.permute.xlu0 %231  ;;  %v2560_v32 = vpack.c.bf16 %v239_v24, %v3665_v38 }
 0x119   :  { %v206_v31 = vsel %vm204_vm3, %v3840_v20, %v2915_v12 }
 0x11a   :  { %2559 = vmatpush1.bf16.msra.mxu1 %v2558_v21  ;;  %2589 = vmatprep.subr.bf16.mxu0 %v2588_v23  ;;  %v2590_v33 = vpack.c.bf16 %v206_v31, %v181_v27 }
 0x11b   :  { %2561 = vmatprep.subr.bf16.mxu1 %v2560_v32 }
 0x11c   :  { %v2924_v34 = vpop.permute.xlu1 %2923  ;;  %2591 = vmatpush1.bf16.msra.mxu0 %v2590_v33  ;;  %v3855_v35 = vpop.permute.xlu0 %2933 }
 0x11d   :  { %v2926_v41 = vunpack.i.h.bf16 %v2924_v34  ;;  %v2925_v47 = vunpack.i.l.bf16 %v2924_v34  ;;  %v2936_v48 = vunpack.i.h.bf16 %v3855_v35  ;;  %v2935_v49 = vunpack.i.l.bf16 %v3855_v35 }
 0x11f   :  { %v240_v52 = vsel %vm235_vm4, %v2925_v47, %v2920_v14  ;;  %v241_v38 = vsel %vm235_vm4, %v2926_v41, %v2925_v47  ;;  %v236_v53 = vsel %vm235_vm4, %v3849_v29, %v2926_v41 }
 0x120   :  { %v3868_v56 = vpop.permute.xlu1 %2928  ;;  %v2562_v61 = vpack.c.bf16 %v240_v52, %v3662_v37  ;;  %v2592_v9 = vpack.c.bf16 %v241_v38, %v3671_v40  ;;  %v2594_v12 = vpack.c.bf16 %v236_v53, %v3668_v39  ;;  %v2944_v15 = vpop.permute.xlu0 %2943  ;;  %v289_v37 = vsel %vm285_vm6, %v2935_v49, %v2936_v48 }
 0x121   :  { %v2931_v14 = vunpack.i.h.bf16 %v3868_v56  ;;  %v2930_v16 = vunpack.i.l.bf16 %v3868_v56  ;;  %v2946_v17 = vunpack.i.h.bf16 %v2944_v15  ;;  %v2945_v19 = vunpack.i.l.bf16 %v2944_v15 }
 0x122   :  { %2563 = vmatpush1.bf16.msra.mxu1 %v2562_v61  ;;  %2593 = vmatprep.subr.bf16.mxu0 %v2592_v9 }
 0x123   :  { %2595 = vmatpush1.bf16.msra.mxu0 %v2594_v12  ;;  %v264_v21 = vsel %vm260_vm5, %v2930_v16, %v2931_v14  ;;  %v290_v32 = vsel %vm285_vm6, %v2945_v19, %v2935_v49  ;;  %v291_v34 = vsel %vm285_vm6, %v2946_v17, %v2945_v19 }
 0x124   :  { %v2939_v39 = vpop.permute.xlu1 %2938  ;;  %v2564_v40 = vpack.c.bf16 %v289_v37, %v264_v21  ;;  %v3883_v23 = vpop.permute.xlu0 %281 }
 0x125   :  { %v2941_v24 = vunpack.i.h.bf16 %v2939_v39  ;;  %v2940_v27 = vunpack.i.l.bf16 %v2939_v39  ;;  %v286_v38 = vsel %vm285_vm6, %v3883_v23, %v2946_v17  ;;  %v323_v17 = vld [vmem:[%s5866_s5] sm:$0xff] }
 0x126   :  { %2565 = vmatprep.subr.bf16.mxu1 %v2564_v40 }
 0x127   :  { %v265_v31 = vsel %vm260_vm5, %v2940_v27, %v2930_v16  ;;  %v266_v33 = vsel %vm260_vm5, %v2941_v24, %v2940_v27 }
 0x128   :  { %v257_v41 = vpop.permute.xlu1 %256  ;;  %v2566_v47 = vpack.c.bf16 %v290_v32, %v265_v31  ;;  %v2596_v52 = vpack.c.bf16 %v291_v34, %v266_v33  ;;  %v3896_v53 = vpop.permute.xlu0 %302 }
 0x129   :  { %v261_v61 = vsel %vm260_vm5, %v257_v41, %v2941_v24 }
 0x12a   :  { %2567 = vmatpush1.bf16.msra.mxu1 %v2566_v47  ;;  %2597 = vmatprep.subr.bf16.mxu0 %v2596_v52  ;;  %v2598_v49 = vpack.c.bf16 %v286_v38, %v261_v61 }
 0x12c   :  { %v301_v9 = vpop.permute.xlu1 %300  ;;  %2599 = vmatpush1.bf16.msra.mxu0 %v2598_v49  ;;  %v309_v12 = vpop.permute.xlu0 %308 }
 0x12d   :  { %v314_v15 = vsel %vm310_vm7, %v301_v9, %v3896_v53 }
 0x12e   :  { %404 = vmatprep.subr.mxu1 %v314_v15 }
 0x130   :  { %v299_v16 = vpop.permute.xlu1 %298  ;;  %v120_v19 = vpop.permute.xlu0 %119 }
 0x131   :  { %v315_v21 = vsel %vm310_vm7, %v299_v16, %v301_v9  ;;  %v316_v37 = vsel %vm310_vm7, %v309_v12, %v299_v16  ;;  %v132_v31 = vsel %vm129_vm0, %v120_v19, %v3779_v10  ;;  %v133_v32 = vsel %vm129_vm0, %v2881_v62, %v120_v19 }
 0x132   :  { %405 = vmatpush1.msra.mxu1 %v315_v21  ;;  %546 = vmatprep.subr.mxu0 %v316_v37 }
 0x133   :  { %2543 = vmatmul.mubr.msk.f32.vlgmr.msra.gmra.mrb[0].mxu1 %vm384_vm8, %v323_v17 }
 0x134   :  { %v307_v39 = vpop.permute.xlu1 %306  ;;  %523 = vmatprep.mubr.f32.mxu1 %v3529_v54  ;;  %v172_v40 = vpop.permute.xlu0 %171 }
 0x135   :  { %v311_v24 = vsel %vm310_vm7, %v307_v39, %v309_v12  ;;  %v182_v10 = vsel %vm179_vm2, %v172_v40, %v3815_v44  ;;  %v183_v62 = vsel %vm179_vm2, %v2901_v36, %v172_v40 }
 0x136   :  { %547 = vmatpush1.msra.mxu0 %v311_v24 }
 0x137   :  { %2545 = vmatmul.mubr.msk.f32.vlgmr.msra.gmra.mrb[0].mxu0 %vm384_vm8, %v323_v17 }
 0x138   :  { %v147_v27 = vpop.permute.xlu1 %146  ;;  %v230_v34 = vpop.permute.xlu0 %229 }
 0x139   :  { %v157_v54 = vsel %vm154_vm1, %v147_v27, %v3801_v28  ;;  %v158_v33 = vsel %vm154_vm1, %v2886_v11, %v147_v27  ;;  %v237_v0 = vsel %vm235_vm4, %v230_v34, %v3849_v29  ;;  %v238_v18 = vsel %vm235_vm4, %v2921_v13, %v230_v34 }
 0x13a   :  { %v2570_v47 = vpack.c.bf16 %v158_v33, %v133_v32  ;;  %v2568_v52 = vpack.c.bf16 %v157_v54, %v132_v31  ;;  %v2576_v29 = vpack.c.bf16 %v237_v0, %v3682_v45  ;;  %v2578_v42 = vpack.c.bf16 %v238_v18, %v3696_v51 }
 0x13c   :  { %v197_v60 = vpop.permute.xlu1 %196  ;;  %2569 = vmatprep.subr.bf16.mxu1 %v2568_v52  ;;  %v280_v36 = vpop.permute.xlu0 %279 }
 0x13d   :  { %v207_v11 = vsel %vm204_vm3, %v197_v60, %v3840_v20  ;;  %v208_v28 = vsel %vm204_vm3, %v2906_v46, %v197_v60  ;;  %2571 = vmatpush1.bf16.msra.mxu1 %v2570_v47  ;;  %v287_v46 = vsel %vm285_vm6, %v280_v36, %v3883_v23  ;;  %v288_v45 = vsel %vm285_vm6, %v2936_v48, %v280_v36 }
 0x13e   :  { %v2574_v44 = vpack.c.bf16 %v208_v28, %v183_v62  ;;  %v2572_v38 = vpack.c.bf16 %v207_v11, %v182_v10 }
 0x140   :  { %v255_v61 = vpop.permute.xlu1 %254  ;;  %2573 = vmatprep.subr.bf16.mxu1 %v2572_v38 }
 0x141   :  { %v262_v20 = vsel %vm260_vm5, %v255_v61, %v257_v41  ;;  %2575 = vmatpush1.bf16.msra.mxu1 %v2574_v44  ;;  %v263_v63 = vsel %vm260_vm5, %v2931_v14, %v255_v61  ;;  %v3532_v14 = vmov 2  }
 0x142   :  { %2577 = vmatprep.subr.bf16.mxu1 %v2576_v29  ;;  %v2580_v13 = vpack.c.bf16 %v287_v46, %v262_v20  ;;  %v2582_v49 = vpack.c.bf16 %v288_v45, %v263_v63  ;;  %3189 = vset.pattern.permute.xlu1 %v3532_v14 }
 0x144   :  { %v305_v41 = vpop.permute.xlu1 %304 }
 0x145   :  { %2579 = vmatpush1.bf16.msra.mxu1 %v2578_v42  ;;  %v312_v51 = vsel %vm310_vm7, %v305_v41, %v307_v39  ;;  %v313_v56 = vsel %vm310_vm7, %v3896_v53, %v305_v41 }
 0x146   :  { %2581 = vmatprep.subr.bf16.mxu1 %v2580_v13 }
 0x149   :  { %2583 = vmatpush1.bf16.msra.mxu1 %v2582_v49 }
 0x14a   :  { %475 = vmatprep.subr.mxu1 %v312_v51 }
 0x14d   :  { %476 = vmatpush1.msra.mxu1 %v313_v56  ;;  %v3975_v48 = vpop.permute.xlu0 %381 }
 0x14e   :  { %2544 = vmatmul.mubr.msk.f32.vlgmr.msra.gmra.mrb[2].mxu1 %vm384_vm8, %v323_v17 }
 0x152   :  { %v3983_v53 = vpop.permute.xlu0 %630 }
 0x155   :  { %v3973_v35 = vpop.permute.xlu1 %625 }
 0x156   :  { %v633_v23 = vmul.f32 %v3973_v35, %v3586_v2  ;;  %v634_v9 = vmul.f32 %v3973_v35, %v3592_v3  ;;  %v637_v16 = vmul.f32 %v3973_v35, %v3616_v7  ;;  %v638_v37 = vmul.f32 %v3973_v35, %v3621_v8 }
 0x159   :  { %v3981_v12 = vpop.permute.xlu1 %647 }
 0x15a   :  { %v655_v17 = vadd.f32 %v3981_v12, %v633_v23  ;;  %v656_v2 = vadd.f32 %v3981_v12, %v634_v9  ;;  %v659_v8 = vadd.f32 %v3981_v12, %v637_v16  ;;  %v660_v33 = vadd.f32 %v3981_v12, %v638_v37 }
 0x15b   :  { %v635_v16 = vmul.f32 %v3973_v35, %v3597_v4 }
 0x15c   :  { %v667_v27 = vmax.f32 %v655_v17, 0.0  ;;  %v668_v34 = vmax.f32 %v656_v2, 0.0  ;;  %v671_v11 = vmax.f32 %v659_v8, 0.0  ;;  %v672_v18 = vmax.f32 %v660_v33, 0.0 }
 0x15d   :  { %v4000_v7 = vpop.permute.xlu1 %652  ;;  %v636_v17 = vmul.f32 %v3973_v35, %v3602_v5 }
 0x15e   :  { %v4018_v28 = vmul.f32 %v667_v27, %v3652_v22  ;;  %v4025_v36 = vmul.f32 %v668_v34, %v3654_v25  ;;  %v4040_v45 = vmul.f32 %v671_v11, %v3656_v26  ;;  %v4050_v49 = vmul.f32 %v672_v18, %v3659_v30  ;;  %v4138_v34 = vld [vmem:[%s5867_s6 + $0x8] sm:$0xff] }
 0x15f   :  { %2546 = vmatprep.mubr.msk.f32.mxu1 %vm1203_vm9, %v4138_v34  ;;  %2547 = vmatprep.mubr.msk.f32.mxu0 %vm1203_vm9, %v4138_v34 }
 0x206   :  { %v454_v15 = vpop.f32.mrb[0].mxu1 }
 0x207   :  { %v455_v19 = vadd.f32 %v454_v15, %v3975_v48  ;;  %v456_v21 = vpop.f32.mrb[1].mxu1 }
 0x208   :  { %v457_v3 = vadd.f32 %v456_v21, %v3975_v48  ;;  %v657_v21 = vadd.f32 %v3981_v12, %v635_v16 }
 0x209   :  { %601 = vst [vmem:[%s5863_s8 + $0x30] sm:$0xff] %v455_v19  ;;  %v639_v39 = vmul.f32 %v3983_v53, %v455_v19 }
 0x20a   :  { %602 = vst [vmem:[%s5863_s8 + $0x38] sm:$0xff] %v457_v3  ;;  %v596_v40 = vpop.f32.mrb[0].mxu0  ;;  %v640_v24 = vmul.f32 %v3983_v53, %v457_v3  ;;  %v658_v3 = vadd.f32 %v3981_v12, %v636_v17 }
 0x20b   :  { %v597_v31 = vadd.f32 %v596_v40, %v3975_v48  ;;  %v598_v32 = vpop.f32.mrb[1].mxu0  ;;  %v661_v54 = vadd.f32 %v4000_v7, %v639_v39 }
 0x20c   :  { %v599_v47 = vadd.f32 %v598_v32, %v3975_v48  ;;  %v662_v52 = vadd.f32 %v4000_v7, %v640_v24  ;;  %v670_v39 = vmax.f32 %v658_v3, 0.0 }
 0x20d   :  { %605 = vst [vmem:[%s5863_s8 + $0x50] sm:$0xff] %v597_v31  ;;  %v643_v10 = vmul.f32 %v3983_v53, %v597_v31  ;;  %v673_v60 = vmax.f32 %v661_v54, 0.0 }
 0x20e   :  { %606 = vst [vmem:[%s5863_s8 + $0x58] sm:$0xff] %v599_v47  ;;  %v644_v62 = vmul.f32 %v3983_v53, %v599_v47  ;;  %v674_v0 = vmax.f32 %v662_v52, 0.0 }
 0x20f   :  { %v665_v44 = vadd.f32 %v4000_v7, %v643_v10  ;;  %v4022_v38 = vmul.f32 %v673_v60, %v3652_v22  ;;  %v1446_v10 = vld [vmem:[%s5860_s2 + $0x10] sm:$0xff] }
 0x210   :  { %v666_v61 = vadd.f32 %v4000_v7, %v644_v62  ;;  %v4029_v29 = vmul.f32 %v674_v0, %v3654_v25  ;;  %v1449_v60 = vld [vmem:[%s5861_s3 + $0x10] sm:$0xff] }
 0x211   :  { %v677_v20 = vmax.f32 %v665_v44, 0.0  ;;  %v4033_v42 = vpack.i.bf16 %v4022_v38, %v4018_v28  ;;  %v2618_v46 = vpack.c.bf16 %v4022_v38, %v4018_v28 }
 0x212   :  { %v678_v63 = vmax.f32 %v666_v61, 0.0  ;;  %v2616_v13 = vpack.c.bf16 %v4029_v29, %v4025_v36  ;;  %v2974_v9 = vpack.i.bf16 %v4029_v29, %v4025_v36 }
 0x213   :  { %v4043_v41 = vmul.f32 %v677_v20, %v3656_v26  ;;  %2955 = vrot.lane.b32.xlu1 %v4033_v42, %s3523_s12  ;;  %2950 = vrot.lane.b32.xlu0 %v4033_v42, %s3522_s1 }
 0x214   :  { %v4053_v51 = vmul.f32 %v678_v63, %v3659_v30 }
 0x215   :  { %v2690_v56 = vpack.c.bf16 %v4043_v41, %v4040_v45  ;;  %v3069_v52 = vpack.i.bf16 %v4043_v41, %v4040_v45 }
 0x216   :  { %v2688_v23 = vpack.c.bf16 %v4053_v51, %v4050_v49  ;;  %v4070_v15 = vpack.i.bf16 %v4053_v51, %v4050_v49 }
 0x217   :  { %2965 = vrot.lane.b32.xlu1 %v4033_v42, %s3525_s14  ;;  %2960 = vrot.lane.b32.xlu0 %v4033_v42, %s3524_s13 }
 0x21b   :  { %2975 = vrot.lane.b32.xlu1 %v2974_v9, %s3522_s1  ;;  %2970 = vrot.lane.b32.xlu0 %v4033_v42, %s3526_s15 }
 0x21f   :  { %2990 = vrot.lane.b32.xlu1 %v4070_v15, %s3523_s12  ;;  %2980 = vrot.lane.b32.xlu0 %v4070_v15, %s3522_s1 }
 0x221   :  { %v525_v19 = vpop.f32.mrb[2].mxu1 }
 0x222   :  { %v4082_v37 = vadd.f32 %v525_v19, %v3975_v48  ;;  %v527_v2 = vpop.f32.mrb[3].mxu1 }
 0x223   :  { %v4086_v4 = vadd.f32 %v527_v2, %v3975_v48  ;;  %2995 = vrot.lane.b32.xlu1 %v2974_v9, %s3524_s13  ;;  %2985 = vrot.lane.b32.xlu0 %v2974_v9, %s3523_s12  ;;  %v669_v48 = vmax.f32 %v657_v21, 0.0 }
 0x224   :  { %603 = vst [vmem:[%s5863_s8 + $0x40] sm:$0xff] %v4082_v37  ;;  %v641_v5 = vmul.f32 %v3983_v53, %v4082_v37 }
 0x225   :  { %604 = vst [vmem:[%s5863_s8 + $0x48] sm:$0xff] %v4086_v4  ;;  %v642_v35 = vmul.f32 %v3983_v53, %v4086_v4  ;;  %v4109_v27 = vmul.f32 %v669_v48, %v3690_v50  ;;  %v4115_v53 = vmul.f32 %v670_v39, %v3675_v43 }
 0x226   :  { %v663_v12 = vadd.f32 %v4000_v7, %v641_v5 }
 0x227   :  { %v664_v40 = vadd.f32 %v4000_v7, %v642_v35  ;;  %3010 = vrot.lane.b32.xlu1 %v4070_v15, %s3525_s14  ;;  %3000 = vrot.lane.b32.xlu0 %v4070_v15, %s3524_s13 }
 0x228   :  { %v675_v24 = vmax.f32 %v663_v12, 0.0 }
 0x229   :  { %v676_v8 = vmax.f32 %v664_v40, 0.0 }
 0x22a   :  { %v4112_v31 = vmul.f32 %v675_v24, %v3690_v50 }
 0x22b   :  { %v4118_v32 = vmul.f32 %v676_v8, %v3675_v43  ;;  %3020 = vrot.lane.b32.xlu1 %v2974_v9, %s3528_s17  ;;  %3005 = vrot.lane.b32.xlu0 %v2974_v9, %s3525_s14 }
 0x22c   :  { %v3024_v7 = vpack.i.bf16 %v4112_v31, %v4109_v27 }
 0x22d   :  { %v3094_v47 = vpack.i.bf16 %v4118_v32, %v4115_v53 }
 0x22f   :  { %3025 = vrot.lane.b32.xlu1 %v3024_v7, %s3526_s15  ;;  %3015 = vrot.lane.b32.xlu0 %v2974_v9, %s3526_s15 }
 0x233   :  { %3030 = vrot.lane.b32.xlu1 %v4033_v42, %s3528_s17  ;;  %3035 = vrot.lane.b32.xlu0 %v2974_v9, %s3527_s16 }
 0x237   :  { %3050 = vrot.lane.b32.xlu1 %v3024_v7, %s3527_s16  ;;  %3040 = vrot.lane.b32.xlu0 %v3024_v7, %s3528_s17 }
 0x23b   :  { %3055 = vrot.lane.b32.xlu1 %v2974_v9, %s3530_s18  ;;  %3045 = vrot.lane.b32.xlu0 %v4033_v42, %s3527_s16 }
 0x23f   :  { %3060 = vrot.lane.b32.xlu1 %v4033_v42, %s3530_s18  ;;  %3065 = vrot.lane.b32.xlu0 %v3024_v7, %s3530_s18 }
 0x243   :  { %3095 = vrot.lane.b32.xlu1 %v3094_v47, %s3522_s1  ;;  %3070 = vrot.lane.b32.xlu0 %v3069_v52, %s3522_s1 }
 0x247   :  { %3100 = vrot.lane.b32.xlu1 %v3094_v47, %s3523_s12  ;;  %3075 = vrot.lane.b32.xlu0 %v3069_v52, %s3523_s12 }
 0x24b   :  { %3105 = vrot.lane.b32.xlu1 %v3094_v47, %s3524_s13  ;;  %3080 = vrot.lane.b32.xlu0 %v3069_v52, %s3524_s13 }
 0x24f   :  { %3110 = vrot.lane.b32.xlu1 %v3094_v47, %s3525_s14  ;;  %3085 = vrot.lane.b32.xlu0 %v3069_v52, %s3525_s14 }
 0x253   :  { %3115 = vrot.lane.b32.xlu1 %v3069_v52, %s3526_s15  ;;  %3090 = vrot.lane.b32.xlu0 %v4070_v15, %s3526_s15 }
 0x257   :  { %3125 = vrot.lane.b32.xlu1 %v3069_v52, %s3528_s17  ;;  %3120 = vrot.lane.b32.xlu0 %v4070_v15, %s3528_s17 }
 0x25b   :  { %3135 = vrot.lane.b32.xlu1 %v4070_v15, %s3527_s16  ;;  %3130 = vrot.lane.b32.xlu0 %v3024_v7, %s3522_s1 }
 0x25f   :  { %3145 = vrot.lane.b32.xlu1 %v3024_v7, %s3523_s12  ;;  %3140 = vrot.lane.b32.xlu0 %v3069_v52, %s3527_s16 }
 0x263   :  { %3155 = vrot.lane.b32.xlu1 %v3069_v52, %s3530_s18  ;;  %3150 = vrot.lane.b32.xlu0 %v4070_v15, %s3530_s18 }
 0x267   :  { %3165 = vrot.lane.b32.xlu1 %v3024_v7, %s3525_s14  ;;  %3160 = vrot.lane.b32.xlu0 %v3024_v7, %s3524_s13 }
 0x26b   :  { %3175 = vrot.lane.b32.xlu1 %v3094_v47, %s3528_s17  ;;  %3170 = vrot.lane.b32.xlu0 %v3094_v47, %s3526_s15 }
 0x26f   :  { %3185 = vrot.lane.b32.xlu1 %v3094_v47, %s3530_s18  ;;  %3180 = vrot.lane.b32.xlu0 %v3094_v47, %s3527_s16 }
 0x273   :  { %1452 = vperm.xlu1 %3189, %v3581_v1   ;;  %1200 = vperm.xlu0 %2948, %v3747_v55  }
 0x277   :  { %1485 = vperm.xlu1 %3189, %v3611_v6   ;;  %3190 = vset.pattern.permute.xlu0 %v3532_v14 }
 0x278   :  { %1457 = vperm.xlu0 %3190, %v3755_v57  }
 0x27b   :  { %1490 = vperm.xlu1 %3189, %v3765_v58  }
 0x27c   :  { %1462 = vperm.xlu0 %3190, %v1446_v10  }
 0x27f   :  { %1495 = vperm.xlu1 %3189, %v1449_v60  }
 0x285   :  { %v2956_v1 = vpop.permute.xlu1 %2955  ;;  %v2951_v55 = vpop.permute.xlu0 %2950 }
 0x286   :  { %v2953_v0 = vunpack.i.h.bf16 %v2951_v55  ;;  %v2952_v11 = vunpack.i.l.bf16 %v2951_v55  ;;  %v2958_v19 = vunpack.i.h.bf16 %v2956_v1  ;;  %v2957_v21 = vunpack.i.l.bf16 %v2956_v1 }
 0x289   :  { %v4194_v62 = vpop.permute.xlu1 %2965  ;;  %v2961_v6 = vpop.permute.xlu0 %2960 }
 0x28a   :  { %v2963_v2 = vunpack.i.h.bf16 %v2961_v6  ;;  %v2962_v35 = vunpack.i.l.bf16 %v2961_v6 }
 0x28d   :  { %v4196_v14 = vpop.permute.xlu1 %2975  ;;  %v4198_v57 = vpop.permute.xlu0 %2970 }
 0x28e   :  { %v5882_v44 = vunpack.i.h.bf16 %v4196_v14  ;;  %v5878_v58 = vunpack.i.l.bf16 %v4196_v14 }
 0x290   :  { %v723_v18 = vsel %vm129_vm0, %v2952_v11, %v5878_v58  ;;  %v724_v61 = vsel %vm129_vm0, %v2953_v0, %v5882_v44 }
 0x291   :  { %v4210_v20 = vpop.permute.xlu1 %2990  ;;  %v4212_v42 = vpop.permute.xlu0 %2980  ;;  %v2600_v63 = vpack.c.bf16 %v724_v61, %v723_v18 }
 0x292   :  { %v2993_v9 = vunpack.i.h.bf16 %v4210_v20  ;;  %v2992_v15 = vunpack.i.l.bf16 %v4210_v20  ;;  %v2983_v16 = vunpack.i.h.bf16 %v4212_v42  ;;  %v2982_v17 = vunpack.i.l.bf16 %v4212_v42 }
 0x293   :  { %2601 = vmatprep.subr.bf16.mxu1 %v2600_v63 }
 0x294   :  { %v725_v3 = vsel %vm129_vm0, %v2982_v17, %v2952_v11  ;;  %v726_v5 = vsel %vm129_vm0, %v2983_v16, %v2953_v0  ;;  %v773_v48 = vsel %vm154_vm1, %v2992_v15, %v2957_v21  ;;  %v774_v12 = vsel %vm154_vm1, %v2993_v9, %v2958_v19 }
 0x295   :  { %v4234_v39 = vpop.permute.xlu1 %2995  ;;  %v4236_v40 = vpop.permute.xlu0 %2985  ;;  %v2602_v24 = vpack.c.bf16 %v726_v5, %v725_v3  ;;  %v2606_v18 = vpack.c.bf16 %v774_v12, %v773_v48  ;;  %v2968_v5 = vunpack.i.h.bf16 %v4194_v62 }
 0x296   :  { %v5870_v8 = vunpack.i.h.bf16 %v4234_v39  ;;  %v5869_v7 = vunpack.i.l.bf16 %v4234_v39  ;;  %v5871_v47 = vunpack.i.h.bf16 %v4236_v40  ;;  %v5876_v52 = vunpack.i.l.bf16 %v4236_v40 }
 0x297   :  { %2603 = vmatpush1.bf16.msra.mxu1 %v2602_v24  ;;  %v2967_v24 = vunpack.i.l.bf16 %v4194_v62 }
 0x298   :  { %v771_v10 = vsel %vm154_vm1, %v2957_v21, %v5876_v52  ;;  %v772_v60 = vsel %vm154_vm1, %v2958_v19, %v5871_v47  ;;  %v819_v1 = vsel %vm179_vm2, %v2962_v35, %v5869_v7  ;;  %v820_v55 = vsel %vm179_vm2, %v2963_v2, %v5870_v8 }
 0x299   :  { %v4258_v6 = vpop.permute.xlu1 %3010  ;;  %v4260_v0 = vpop.permute.xlu0 %3000  ;;  %v2604_v11 = vpack.c.bf16 %v772_v60, %v771_v10  ;;  %v2608_v3 = vpack.c.bf16 %v820_v55, %v819_v1  ;;  %v2973_v47 = vunpack.i.h.bf16 %v4198_v57 }
 0x29a   :  { %v3013_v61 = vunpack.i.h.bf16 %v4258_v6  ;;  %v3012_v63 = vunpack.i.l.bf16 %v4258_v6  ;;  %v3003_v19 = vunpack.i.h.bf16 %v4260_v0  ;;  %v3002_v21 = vunpack.i.l.bf16 %v4260_v0 }
 0x29b   :  { %2605 = vmatprep.subr.bf16.mxu1 %v2604_v11 }
 0x29c   :  { %v821_v10 = vsel %vm179_vm2, %v3002_v21, %v2962_v35  ;;  %v822_v48 = vsel %vm179_vm2, %v3003_v19, %v2963_v2  ;;  %2607 = vmatpush1.bf16.msra.mxu1 %v2606_v18  ;;  %v869_v62 = vsel %vm204_vm3, %v3012_v63, %v2967_v24  ;;  %v870_v35 = vsel %vm204_vm3, %v3013_v61, %v2968_v5 }
 0x29d   :  { %v3021_v12 = vpop.permute.xlu1 %3020  ;;  %v4276_v60 = vpop.permute.xlu0 %3005  ;;  %2609 = vmatprep.subr.bf16.mxu1 %v2608_v3  ;;  %v2610_v1 = vpack.c.bf16 %v822_v48, %v821_v10  ;;  %v2614_v54 = vpack.c.bf16 %v870_v35, %v869_v62 }
 0x29e   :  { %v5874_v55 = vunpack.i.h.bf16 %v4276_v60  ;;  %v5875_v2 = vunpack.i.l.bf16 %v4276_v60  ;;  %v3022_v36 = vunpack.i.l.bf16 %v3021_v12 }
 0x2a0   :  { %2611 = vmatpush1.bf16.msra.mxu1 %v2610_v1  ;;  %v867_v11 = vsel %vm204_vm3, %v2967_v24, %v5875_v2  ;;  %v868_v18 = vsel %vm204_vm3, %v2968_v5, %v5874_v55  ;;  %v2972_v24 = vunpack.i.l.bf16 %v4198_v57 }
 0x2a1   :  { %v4296_v3 = vpop.permute.xlu1 %3025  ;;  %v3016_v10 = vpop.permute.xlu0 %3015  ;;  %v2612_v48 = vpack.c.bf16 %v868_v18, %v867_v11 }
 0x2a2   :  { %v5873_v33 = vunpack.i.h.bf16 %v4296_v3  ;;  %v5872_v7 = vunpack.i.l.bf16 %v4296_v3  ;;  %v3018_v1 = vunpack.i.h.bf16 %v3016_v10  ;;  %v3017_v8 = vunpack.i.l.bf16 %v3016_v10 }
 0x2a3   :  { %2613 = vmatprep.subr.bf16.mxu1 %v2612_v48 }
 0x2a4   :  { %2615 = vmatpush1.bf16.msra.mxu1 %v2614_v54  ;;  %v925_v5 = vsel %vm235_vm4, %v3017_v8, %v5872_v7  ;;  %v926_v62 = vsel %vm235_vm4, %v3018_v1, %v5873_v33  ;;  %v927_v54 = vsel %vm235_vm4, %v2972_v24, %v3017_v8  ;;  %v928_v18 = vsel %vm235_vm4, %v2973_v47, %v3018_v1 }
 0x2a5   :  { %v4310_v35 = vpop.permute.xlu1 %3030  ;;  %v3036_v11 = vpop.permute.xlu0 %3035  ;;  %2617 = vmatprep.subr.bf16.mxu1 %v2616_v13  ;;  %v2620_v7 = vpack.c.bf16 %v926_v62, %v925_v5  ;;  %v3023_v33 = vunpack.i.h.bf16 %v3021_v12  ;;  %v2622_v2 = vpack.c.bf16 %v928_v18, %v927_v54 }
 0x2a6   :  { %v3033_v10 = vunpack.i.h.bf16 %v4310_v35  ;;  %v3032_v48 = vunpack.i.l.bf16 %v4310_v35  ;;  %v3038_v29 = vunpack.i.h.bf16 %v3036_v11  ;;  %v3037_v13 = vunpack.i.l.bf16 %v3036_v11 }
 0x2a7   :  { %v5947_v35 = vunpack.i.h.bf16 %v4196_v14 }
 0x2a8   :  { %2619 = vmatpush1.bf16.msra.mxu1 %v2618_v46  ;;  %v975_v28 = vsel %vm260_vm5, %v3032_v48, %v3022_v36  ;;  %v976_v38 = vsel %vm260_vm5, %v3033_v10, %v3023_v33 }
 0x2a9   :  { %v4328_v55 = vpop.permute.xlu1 %3050  ;;  %v4330_v8 = vpop.permute.xlu0 %3040  ;;  %2621 = vmatprep.subr.bf16.mxu1 %v2620_v7  ;;  %v2626_v58 = vpack.c.bf16 %v976_v38, %v975_v28 }
 0x2aa   :  { %v5880_v1 = vunpack.i.h.bf16 %v4328_v55  ;;  %v5879_v52 = vunpack.i.l.bf16 %v4328_v55  ;;  %v5881_v5 = vunpack.i.h.bf16 %v4330_v8  ;;  %v5877_v62 = vunpack.i.l.bf16 %v4330_v8 }
 0x2ac   :  { %2623 = vmatpush1.bf16.msra.mxu1 %v2622_v2  ;;  %v973_v46 = vsel %vm260_vm5, %v3022_v36, %v5877_v62  ;;  %v974_v7 = vsel %vm260_vm5, %v3023_v33, %v5881_v5  ;;  %v1021_v12 = vsel %vm285_vm6, %v3037_v13, %v5879_v52  ;;  %v1022_v2 = vsel %vm285_vm6, %v3038_v29, %v5880_v1 }
 0x2ad   :  { %v3056_v11 = vpop.permute.xlu1 %3055  ;;  %v4360_v54 = vpop.permute.xlu0 %3045  ;;  %v2624_v18 = vpack.c.bf16 %v974_v7, %v973_v46  ;;  %v2628_v33 = vpack.c.bf16 %v1022_v2, %v1021_v12 }
 0x2ae   :  { %v5884_v36 = vunpack.i.h.bf16 %v4360_v54  ;;  %v5886_v62 = vunpack.i.l.bf16 %v4360_v54  ;;  %v3058_v5 = vunpack.i.h.bf16 %v3056_v11  ;;  %v3057_v46 = vunpack.i.l.bf16 %v3056_v11 }
 0x2af   :  { %2625 = vmatprep.subr.bf16.mxu1 %v2624_v18 }
 0x2b0   :  { %v1023_v52 = vsel %vm285_vm6, %v5886_v62, %v3037_v13  ;;  %v1024_v1 = vsel %vm285_vm6, %v5884_v36, %v3038_v29  ;;  %2627 = vmatpush1.bf16.msra.mxu1 %v2626_v58 }
 0x2b1   :  { %v4372_v7 = vpop.permute.xlu1 %3060  ;;  %v4374_v44 = vpop.permute.xlu0 %3065  ;;  %2629 = vmatprep.subr.bf16.mxu1 %v2628_v33  ;;  %v2630_v28 = vpack.c.bf16 %v1024_v1, %v1023_v52 }
 0x2b2   :  { %v5885_v38 = vunpack.i.h.bf16 %v4372_v7  ;;  %v5883_v12 = vunpack.i.l.bf16 %v4372_v7  ;;  %v5887_v13 = vunpack.i.h.bf16 %v4374_v44  ;;  %v5888_v2 = vunpack.i.l.bf16 %v4374_v44 }
 0x2b4   :  { %v1071_v58 = vsel %vm310_vm7, %v5883_v12, %v3057_v46  ;;  %v1072_v29 = vsel %vm310_vm7, %v5885_v38, %v3058_v5  ;;  %2631 = vmatpush1.bf16.msra.mxu1 %v2630_v28  ;;  %v1069_v52 = vsel %vm310_vm7, %v3057_v46, %v5888_v2  ;;  %v1070_v1 = vsel %vm310_vm7, %v3058_v5, %v5887_v13 }
 0x2b5   :  { %v4396_v11 = vpop.permute.xlu1 %3095  ;;  %v3071_v18 = vpop.permute.xlu0 %3070  ;;  %v2632_v33 = vpack.c.bf16 %v1070_v1, %v1069_v52  ;;  %v2634_v12 = vpack.c.bf16 %v1072_v29, %v1071_v58  ;;  %v4411_v58 = vld [vmem:[%s5867_s6] sm:$0xff] }
 0x2b6   :  { %v5889_v36 = vunpack.i.h.bf16 %v4396_v11  ;;  %v5890_v38 = vunpack.i.l.bf16 %v4396_v11  ;;  %v3073_v28 = vunpack.i.h.bf16 %v3071_v18  ;;  %v3072_v62 = vunpack.i.l.bf16 %v3071_v18 }
 0x2b7   :  { %2633 = vmatprep.subr.bf16.mxu1 %v2632_v33 }
 0x2b8   :  { %v718_v46 = vsel %vm129_vm0, %v5889_v36, %v3073_v28  ;;  %v717_v5 = vsel %vm129_vm0, %v5890_v38, %v3072_v62  ;;  %2635 = vmatpush1.bf16.msra.mxu1 %v2634_v12  ;;  %v715_v29 = vsel %vm129_vm0, %v3072_v62, %v2982_v17  ;;  %v716_v52 = vsel %vm129_vm0, %v3073_v28, %v2983_v16 }
 0x2b9   :  { %v4421_v1 = vpop.permute.xlu1 %3100  ;;  %v3076_v18 = vpop.permute.xlu0 %3075  ;;  %v2672_v33 = vpack.c.bf16 %v716_v52, %v715_v29  ;;  %v2674_v12 = vpack.c.bf16 %v718_v46, %v717_v5 }
 0x2ba   :  { %v3103_v13 = vunpack.i.h.bf16 %v4421_v1  ;;  %v3102_v2 = vunpack.i.l.bf16 %v4421_v1  ;;  %v3078_v36 = vunpack.i.h.bf16 %v3076_v18  ;;  %v3077_v38 = vunpack.i.l.bf16 %v3076_v18 }
 0x2bb   :  { %1272 = vmatmul.mubr.f32.vlgmr.msra.gmra.mrb[4].mxu1 %v4411_v58  ;;  %2673 = vmatprep.subr.bf16.mxu1 %v2672_v33 }
 0x2bc   :  { %v766_v42 = vsel %vm154_vm1, %v3103_v13, %v3078_v36  ;;  %v765_v16 = vsel %vm154_vm1, %v3102_v2, %v3077_v38  ;;  %2675 = vmatpush1.bf16.msra.mxu1 %v2674_v12  ;;  %v763_v17 = vsel %vm154_vm1, %v3077_v38, %v2992_v15  ;;  %v764_v62 = vsel %vm154_vm1, %v3078_v36, %v2993_v9 }
 0x2bd   :  { %v4442_v28 = vpop.permute.xlu1 %3105  ;;  %v3081_v46 = vpop.permute.xlu0 %3080  ;;  %v2676_v5 = vpack.c.bf16 %v764_v62, %v763_v17  ;;  %v2678_v29 = vpack.c.bf16 %v766_v42, %v765_v16  ;;  %2548 = vmatprep.mubr.msk.f32.mxu1 %vm1203_vm9, %v4138_v34 }
 0x2be   :  { %v3108_v52 = vunpack.i.h.bf16 %v4442_v28  ;;  %v3107_v18 = vunpack.i.l.bf16 %v4442_v28  ;;  %v3083_v33 = vunpack.i.h.bf16 %v3081_v46  ;;  %v3082_v12 = vunpack.i.l.bf16 %v3081_v46 }
 0x2bf   :  { %2677 = vmatprep.subr.bf16.mxu1 %v2676_v5  ;;  %v5961_v28 = vunpack.i.l.bf16 %v4330_v8 }
 0x2c0   :  { %v814_v20 = vsel %vm179_vm2, %v3108_v52, %v3083_v33  ;;  %v813_v9 = vsel %vm179_vm2, %v3107_v18, %v3082_v12  ;;  %2679 = vmatpush1.bf16.msra.mxu1 %v2678_v29  ;;  %v811_v34 = vsel %vm179_vm2, %v3082_v12, %v3002_v21  ;;  %v812_v15 = vsel %vm179_vm2, %v3083_v33, %v3003_v19 }
 0x2c1   :  { %v4464_v36 = vpop.permute.xlu1 %3110  ;;  %v3086_v38 = vpop.permute.xlu0 %3085  ;;  %v2680_v42 = vpack.c.bf16 %v812_v15, %v811_v34  ;;  %v2682_v16 = vpack.c.bf16 %v814_v20, %v813_v9 }
 0x2c2   :  { %v3113_v17 = vunpack.i.h.bf16 %v4464_v36  ;;  %v3112_v62 = vunpack.i.l.bf16 %v4464_v36  ;;  %v3088_v46 = vunpack.i.h.bf16 %v3086_v38  ;;  %v3087_v5 = vunpack.i.l.bf16 %v3086_v38 }
 0x2c3   :  { %2681 = vmatprep.subr.bf16.mxu1 %v2680_v42  ;;  %v5964_v36 = vunpack.i.l.bf16 %v4296_v3 }
 0x2c4   :  { %v862_v0 = vsel %vm204_vm3, %v3113_v17, %v3088_v46  ;;  %v861_v19 = vsel %vm204_vm3, %v3112_v62, %v3087_v5  ;;  %2683 = vmatpush1.bf16.msra.mxu1 %v2682_v16  ;;  %v859_v21 = vsel %vm204_vm3, %v3087_v5, %v3012_v63  ;;  %v860_v29 = vsel %vm204_vm3, %v3088_v46, %v3013_v61 }
 0x2c5   :  { %v4484_v33 = vpop.permute.xlu1 %3115  ;;  %v3091_v12 = vpop.permute.xlu0 %3090  ;;  %v2684_v20 = vpack.c.bf16 %v860_v29, %v859_v21  ;;  %v2686_v9 = vpack.c.bf16 %v862_v0, %v861_v19 }
 0x2c6   :  { %v3118_v34 = vunpack.i.h.bf16 %v4484_v33  ;;  %v3117_v15 = vunpack.i.l.bf16 %v4484_v33  ;;  %v3093_v38 = vunpack.i.h.bf16 %v3091_v12  ;;  %v3092_v42 = vunpack.i.l.bf16 %v3091_v12 }
 0x2c7   :  { %2685 = vmatprep.subr.bf16.mxu1 %v2684_v20 }
 0x2c8   :  { %2687 = vmatpush1.bf16.msra.mxu1 %v2686_v9  ;;  %v929_v6 = vsel %vm235_vm4, %v3092_v42, %v2972_v24  ;;  %v930_v61 = vsel %vm235_vm4, %v3093_v38, %v2973_v47  ;;  %v920_v46 = vsel %vm235_vm4, %v3118_v34, %v3093_v38  ;;  %v919_v57 = vsel %vm235_vm4, %v3117_v15, %v3092_v42 }
 0x2c9   :  { %v4496_v63 = vpop.permute.xlu1 %3125  ;;  %v3121_v16 = vpop.permute.xlu0 %3120  ;;  %2689 = vmatprep.subr.bf16.mxu1 %v2688_v23  ;;  %v2692_v19 = vpack.c.bf16 %v930_v61, %v929_v6  ;;  %v2694_v29 = vpack.c.bf16 %v920_v46, %v919_v57  ;;  %v5949_v6 = vunpack.i.l.bf16 %v4396_v11 }
 0x2ca   :  { %v3123_v24 = vunpack.i.h.bf16 %v3121_v16  ;;  %v3122_v5 = vunpack.i.l.bf16 %v3121_v16  ;;  %v3128_v47 = vunpack.i.h.bf16 %v4496_v63  ;;  %v3127_v0 = vunpack.i.l.bf16 %v4496_v63 }
 0x2cb   :  { %v5950_v16 = vunpack.i.h.bf16 %v4396_v11 }
 0x2cc   :  { %2691 = vmatpush1.bf16.msra.mxu1 %v2690_v56  ;;  %v977_v49 = vsel %vm260_vm5, %v3122_v5, %v3032_v48  ;;  %v978_v51 = vsel %vm260_vm5, %v3123_v24, %v3033_v10  ;;  %v968_v45 = vsel %vm260_vm5, %v3128_v47, %v3123_v24  ;;  %v967_v41 = vsel %vm260_vm5, %v3127_v0, %v3122_v5 }
 0x2cd   :  { %v3136_v23 = vpop.permute.xlu1 %3135  ;;  %v3131_v21 = vpop.permute.xlu0 %3130  ;;  %2693 = vmatprep.subr.bf16.mxu1 %v2692_v19  ;;  %v2696_v56 = vpack.c.bf16 %v978_v51, %v977_v49  ;;  %v5948_v48 = vunpack.i.l.bf16 %v4196_v14  ;;  %v5951_v19 = vunpack.i.l.bf16 %v4360_v54  ;;  %v5952_v51 = vunpack.i.h.bf16 %v4360_v54 }
 0x2ce   :  { %v3138_v12 = vunpack.i.h.bf16 %v3136_v23  ;;  %v3137_v20 = vunpack.i.l.bf16 %v3136_v23  ;;  %v3133_v9 = vunpack.i.h.bf16 %v3131_v21  ;;  %v3132_v38 = vunpack.i.l.bf16 %v3131_v21 }
 0x2d0   :  { %v722_v10 = vsel %vm129_vm0, %v5947_v35, %v3133_v9  ;;  %v721_v42 = vsel %vm129_vm0, %v5948_v48, %v3132_v38  ;;  %2695 = vmatpush1.bf16.msra.mxu1 %v2694_v29  ;;  %v719_v61 = vsel %vm129_vm0, %v3132_v38, %v5949_v6  ;;  %v720_v46 = vsel %vm129_vm0, %v3133_v9, %v5950_v16 }
 0x2d1   :  { %v2638_v57 = vpack.c.bf16 %v722_v10, %v721_v42  ;;  %v3146_v24 = vpop.permute.xlu1 %3145  ;;  %v4546_v5 = vpop.permute.xlu0 %3140  ;;  %2697 = vmatprep.subr.bf16.mxu1 %v2696_v56  ;;  %v2636_v14 = vpack.c.bf16 %v720_v46, %v719_v61  ;;  %v1025_v49 = vsel %vm285_vm6, %v3137_v20, %v5951_v19  ;;  %v1026_v23 = vsel %vm285_vm6, %v3138_v12, %v5952_v51 }
 0x2d2   :  { %v3148_v11 = vunpack.i.h.bf16 %v3146_v24  ;;  %v3147_v21 = vunpack.i.l.bf16 %v3146_v24  ;;  %v3143_v29 = vunpack.i.h.bf16 %v4546_v5  ;;  %v3142_v9 = vunpack.i.l.bf16 %v4546_v5 }
 0x2d3   :  { %2637 = vmatprep.subr.bf16.mxu0 %v2636_v14  ;;  %v2698_v38 = vpack.c.bf16 %v968_v45, %v967_v41  ;;  %v2700_v56 = vpack.c.bf16 %v1026_v23, %v1025_v49  ;;  %v5953_v35 = vunpack.i.l.bf16 %v4236_v40  ;;  %v5954_v48 = vunpack.i.h.bf16 %v4236_v40 }
 0x2d4   :  { %v1016_v42 = vsel %vm285_vm6, %v3143_v29, %v3138_v12  ;;  %v1015_v45 = vsel %vm285_vm6, %v3142_v9, %v3137_v20  ;;  %2639 = vmatpush1.bf16.msra.mxu0 %v2638_v57  ;;  %v767_v16 = vsel %vm154_vm1, %v3147_v21, %v3102_v2  ;;  %v768_v12 = vsel %vm154_vm1, %v3148_v11, %v3103_v13 }
 0x2d5   :  { %v769_v10 = vsel %vm154_vm1, %v5953_v35, %v3147_v21  ;;  %v770_v54 = vsel %vm154_vm1, %v5954_v48, %v3148_v11  ;;  %v2702_v6 = vpack.c.bf16 %v1016_v42, %v1015_v45  ;;  %2699 = vmatpush1.bf16.msra.mxu1 %v2698_v38  ;;  %v4574_v61 = vpop.permute.xlu1 %3155  ;;  %v3151_v40 = vpop.permute.xlu0 %3150  ;;  %v2640_v14 = vpack.c.bf16 %v768_v12, %v767_v16 }
 0x2d6   :  { %v2642_v41 = vpack.c.bf16 %v770_v54, %v769_v10  ;;  %v3158_v46 = vunpack.i.h.bf16 %v4574_v61  ;;  %v3157_v20 = vunpack.i.l.bf16 %v4574_v61  ;;  %v3153_v57 = vunpack.i.h.bf16 %v3151_v40  ;;  %2701 = vmatprep.subr.bf16.mxu1 %v2700_v56 }
 0x2d7   :  { %v3152_v24 = vunpack.i.l.bf16 %v3151_v40  ;;  %v5955_v13 = vunpack.i.l.bf16 %v4372_v7  ;;  %v5956_v49 = vunpack.i.h.bf16 %v4372_v7  ;;  %2641 = vmatprep.subr.bf16.mxu0 %v2640_v14  ;;  %v5957_v54 = vunpack.i.l.bf16 %v4276_v60 }
 0x2d8   :  { %v1064_v19 = vsel %vm310_vm7, %v3158_v46, %v3153_v57  ;;  %2643 = vmatpush1.bf16.msra.mxu0 %v2642_v41  ;;  %v5958_v42 = vunpack.i.h.bf16 %v4276_v60  ;;  %v5960_v40 = vunpack.i.l.bf16 %v4234_v39 }
 0x2d9   :  { %v1063_v2 = vsel %vm310_vm7, %v3157_v20, %v3152_v24  ;;  %v1073_v1 = vsel %vm310_vm7, %v3152_v24, %v5955_v13  ;;  %v1074_v51 = vsel %vm310_vm7, %v3153_v57, %v5956_v49  ;;  %2703 = vmatpush1.bf16.msra.mxu1 %v2702_v6  ;;  %v3166_v11 = vpop.permute.xlu1 %3165  ;;  %v3161_v21 = vpop.permute.xlu0 %3160  ;;  %v5959_v6 = vunpack.i.h.bf16 %v4234_v39 }
 0x2da   :  { %v2706_v23 = vpack.c.bf16 %v1064_v19, %v1063_v2  ;;  %v2704_v38 = vpack.c.bf16 %v1074_v51, %v1073_v1  ;;  %v3168_v56 = vunpack.i.h.bf16 %v3166_v11  ;;  %v3167_v35 = vunpack.i.l.bf16 %v3166_v11 }
 0x2db   :  { %v3163_v10 = vunpack.i.h.bf16 %v3161_v21  ;;  %v3162_v48 = vunpack.i.l.bf16 %v3161_v21  ;;  %v5963_v21 = vunpack.i.h.bf16 %v4296_v3 }
 0x2dc   :  { %2705 = vmatprep.subr.bf16.mxu1 %v2704_v38  ;;  %v865_v7 = vsel %vm204_vm3, %v5957_v54, %v3167_v35  ;;  %v866_v45 = vsel %vm204_vm3, %v5958_v42, %v3168_v56  ;;  %v863_v51 = vsel %vm204_vm3, %v3167_v35, %v3112_v62 }
 0x2dd   :  { %v818_v41 = vsel %vm179_vm2, %v5959_v6, %v3163_v10  ;;  %v817_v16 = vsel %vm179_vm2, %v5960_v40, %v3162_v48  ;;  %v2650_v12 = vpack.c.bf16 %v866_v45, %v865_v7  ;;  %2707 = vmatpush1.bf16.msra.mxu1 %v2706_v23  ;;  %v3176_v24 = vpop.permute.xlu1 %3175  ;;  %v3171_v14 = vpop.permute.xlu0 %3170  ;;  %v815_v60 = vsel %vm179_vm2, %v3162_v48, %v3107_v18 }
 0x2de   :  { %v2646_v57 = vpack.c.bf16 %v818_v41, %v817_v16  ;;  %v816_v19 = vsel %vm179_vm2, %v3163_v10, %v3108_v52  ;;  %v3178_v2 = vunpack.i.h.bf16 %v3176_v24  ;;  %v3177_v39 = vunpack.i.l.bf16 %v3176_v24 }
 0x2df   :  { %v3173_v13 = vunpack.i.h.bf16 %v3171_v14  ;;  %v3172_v1 = vunpack.i.l.bf16 %v3171_v14  ;;  %v2644_v49 = vpack.c.bf16 %v816_v19, %v815_v60  ;;  %v864_v18 = vsel %vm204_vm3, %v3168_v56, %v3113_v17 }
 0x2e0   :  { %v971_v52 = vsel %vm260_vm5, %v5961_v28, %v3177_v39  ;;  %v5962_v23 = vunpack.i.h.bf16 %v4330_v8  ;;  %1414 = vmatmul.mubr.f32.vlgmr.msra.gmra.mrb[6].mxu1 %v4411_v58  ;;  %v2648_v10 = vpack.c.bf16 %v864_v18, %v863_v51  ;;  %v5965_v45 = vunpack.i.l.bf16 %v4374_v44 }
 0x2e1   :  { %v924_v62 = vsel %vm235_vm4, %v5963_v21, %v3173_v13  ;;  %v923_v17 = vsel %vm235_vm4, %v5964_v36, %v3172_v1  ;;  %2645 = vmatprep.subr.bf16.mxu0 %v2644_v49  ;;  %v3186_v35 = vpop.permute.xlu1 %3185  ;;  %v3181_v8 = vpop.permute.xlu0 %3180  ;;  %v5966_v6 = vunpack.i.h.bf16 %v4374_v44  ;;  %v5967_v40 = vunpack.i.h.bf16 %v4328_v55  ;;  %v1433_v36 = vld [vmem:[%s5863_s8 + $0x38] sm:$0xff] }
 0x2e2   :  { %v972_v11 = vsel %vm260_vm5, %v5962_v23, %v3178_v2  ;;  %v2658_v56 = vpack.c.bf16 %v924_v62, %v923_v17  ;;  %2647 = vmatpush1.bf16.msra.mxu0 %v2646_v57  ;;  %v3188_v48 = vunpack.i.h.bf16 %v3186_v35  ;;  %v3187_v54 = vunpack.i.l.bf16 %v3186_v35  ;;  %v1432_v62 = vld [vmem:[%s5863_s8 + $0x30] sm:$0xff] }
 0x2e3   :  { %v2662_v38 = vpack.c.bf16 %v972_v11, %v971_v52  ;;  %v3183_v7 = vunpack.i.h.bf16 %v3181_v8  ;;  %v3182_v42 = vunpack.i.l.bf16 %v3181_v8  ;;  %2649 = vmatprep.subr.bf16.mxu0 %v2648_v10  ;;  %v5968_v57 = vunpack.i.l.bf16 %v4328_v55 }
 0x2e4   :  { %v1067_v3 = vsel %vm310_vm7, %v5965_v45, %v3187_v54  ;;  %v1068_v41 = vsel %vm310_vm7, %v5966_v6, %v3188_v48  ;;  %v921_v44 = vsel %vm235_vm4, %v3172_v1, %v3117_v15  ;;  %v922_v19 = vsel %vm235_vm4, %v3173_v13, %v3118_v34  ;;  %v1429_v15 = vld [vmem:[%s5863_s8 + $0x18] sm:$0xff] }
 0x2e5   :  { %v1020_v16 = vsel %vm285_vm6, %v5967_v40, %v3183_v7  ;;  %v1019_v24 = vsel %vm285_vm6, %v5968_v57, %v3182_v42  ;;  %v2670_v14 = vpack.c.bf16 %v1068_v41, %v1067_v3  ;;  %v5969_v49 = vpack.c.bf16 %v4118_v32, %v4115_v53  ;;  %v1427_v32 = vld [vmem:[%s5863_s8 + $0x8] sm:$0xff] }
 0x2e6   :  { %v2666_v60 = vpack.c.bf16 %v1020_v16, %v1019_v24  ;;  %2651 = vmatpush1.bf16.msra.mxu0 %v2650_v12  ;;  %v2656_v55 = vpack.c.bf16 %v922_v19, %v921_v44  ;;  %v5970_v51 = vpack.c.bf16 %v4112_v31, %v4109_v27  ;;  %v969_v12 = vsel %vm260_vm5, %v3177_v39, %v3127_v0  ;;  %v1426_v31 = vld [vmem:[%s5863_s8] sm:$0xff] }
 0x2e7   :  { %2653 = vmatprep.subr.bf16.mxu0 %v5969_v49  ;;  %v970_v33 = vsel %vm260_vm5, %v3178_v2, %v3128_v47  ;;  %v1017_v53 = vsel %vm285_vm6, %v3182_v42, %v3142_v9  ;;  %v1018_v27 = vsel %vm285_vm6, %v3183_v7, %v3143_v29  ;;  %v1430_v47 = vld [vmem:[%s5863_s8 + $0x20] sm:$0xff]  ;;  %v1065_v29 = vsel %vm310_vm7, %v3187_v54, %v3157_v20  ;;  %v1431_v2 = vld [vmem:[%s5863_s8 + $0x28] sm:$0xff]  ;;  %v1436_v54 = vld [vmem:[%s5863_s8 + $0x50] sm:$0xff] }
 0x2e8   :  { %v2660_v34 = vpack.c.bf16 %v970_v33, %v969_v12  ;;  %v2664_v63 = vpack.c.bf16 %v1018_v27, %v1017_v53  ;;  %v1066_v9 = vsel %vm310_vm7, %v3188_v48, %v3158_v46  ;;  %v1437_v7 = vld [vmem:[%s5863_s8 + $0x58] sm:$0xff]  ;;  %v1428_v33 = vld [vmem:[%s5863_s8 + $0x10] sm:$0xff] }
 0x2e9   :  { %v2668_v28 = vpack.c.bf16 %v1066_v9, %v1065_v29 }
 0x2ea   :  { %2655 = vmatpush1.bf16.msra.mxu0 %v5970_v51 }
 0x2eb   :  { %2657 = vmatprep.subr.bf16.mxu0 %v2656_v55 }
 0x2ee   :  { %2659 = vmatpush1.bf16.msra.mxu0 %v2658_v56 }
 0x2ef   :  { %2661 = vmatprep.subr.bf16.mxu0 %v2660_v34 }
 0x2f2   :  { %2663 = vmatpush1.bf16.msra.mxu0 %v2662_v38  ;;  %v1453_v0 = vpop.permute.xlu1 %1452  ;;  %v4709_v5 = vpop.permute.xlu0 %1200 }
 0x2f3   :  { %2665 = vmatprep.subr.bf16.mxu0 %v2664_v63  ;;  %v1465_v39 = vmul.f32 %v1453_v0, %v1426_v31  ;;  %v1466_v13 = vmul.f32 %v1453_v0, %v1427_v32  ;;  %v1468_v1 = vmul.f32 %v1453_v0, %v1429_v15  ;;  %v1469_v18 = vmul.f32 %v1453_v0, %v1430_v47 }
 0x2f4   :  { %v1470_v52 = vmul.f32 %v1453_v0, %v1431_v2  ;;  %v1467_v34 = vmul.f32 %v1453_v0, %v1428_v33 }
 0x2f6   :  { %2667 = vmatpush1.bf16.msra.mxu0 %v2666_v60  ;;  %v1486_v23 = vpop.permute.xlu1 %1485 }
 0x2f7   :  { %2669 = vmatprep.subr.bf16.mxu0 %v2668_v28  ;;  %v1498_v20 = vadd.f32 %v1486_v23, %v1465_v39  ;;  %v1499_v11 = vadd.f32 %v1486_v23, %v1466_v13  ;;  %v4722_v61 = vadd.f32 %v1486_v23, %v1468_v1  ;;  %v1458_v21 = vpop.permute.xlu0 %1457  ;;  %v4724_v46 = vadd.f32 %v1486_v23, %v1469_v18 }
 0x2f8   :  { %v1471_v17 = vmul.f32 %v1458_v21, %v1432_v62  ;;  %v1472_v38 = vmul.f32 %v1458_v21, %v1433_v36  ;;  %v1503_v56 = vadd.f32 %v1486_v23, %v1470_v52  ;;  %v1474_v35 = vmul.f32 %v1458_v21, %v4086_v4 }
 0x2f9   :  { %v1516_v10 = vmax.f32 %v1498_v20, 0.0  ;;  %v1517_v48 = vmax.f32 %v1499_v11, 0.0  ;;  %v1475_v42 = vmul.f32 %v1458_v21, %v1436_v54  ;;  %v1476_v45 = vmul.f32 %v1458_v21, %v1437_v7 }
 0x2fa   :  { %2671 = vmatpush1.bf16.msra.mxu0 %v2670_v14  ;;  %v1491_v8 = vpop.permute.xlu1 %1490  ;;  %v1521_v4 = vmax.f32 %v1503_v56, 0.0  ;;  %v1500_v31 = vadd.f32 %v1486_v23, %v1467_v34  ;;  %v1473_v29 = vmul.f32 %v1458_v21, %v4082_v37  ;;  %v1519_v39 = vmax.f32 %v4722_v61, 0.0 }
 0x2fb   :  { %v1504_v3 = vadd.f32 %v1491_v8, %v1471_v17  ;;  %v1505_v6 = vadd.f32 %v1491_v8, %v1472_v38  ;;  %v4739_v41 = vadd.f32 %v1491_v8, %v1474_v35  ;;  %v4742_v40 = vadd.f32 %v1491_v8, %v1475_v42  ;;  %v4836_v20 = vpop.permute.xlu0 %1462 }
 0x2fc   :  { %v1509_v16 = vadd.f32 %v1491_v8, %v1476_v45  ;;  %v4745_v57 = vmul.f32 %v1516_v10, %v3652_v22  ;;  %v4748_v24 = vmul.f32 %v1517_v48, %v3654_v25  ;;  %v1518_v15 = vmax.f32 %v1500_v31, 0.0 }
 0x2fd   :  { %1343 = vmatmul.mubr.f32.vlgmr.msra.gmra.mrb[2].mxu0 %v4411_v58  ;;  %v1522_v14 = vmax.f32 %v1504_v3, 0.0  ;;  %v1523_v60 = vmax.f32 %v1505_v6, 0.0  ;;  %v4757_v58 = vmul.f32 %v1521_v4, %v3659_v30  ;;  %v1506_v9 = vadd.f32 %v1491_v8, %v1473_v29 }
 0x2fe   :  { %v1527_v44 = vmax.f32 %v1509_v16, 0.0  ;;  %v3206_v27 = vpack.i.bf16 %v4748_v24, %v4745_v57  ;;  %v4797_v47 = vmul.f32 %v1518_v15, %v3690_v50  ;;  %v1520_v13 = vmax.f32 %v4724_v46, 0.0  ;;  %v4834_v23 = vpop.permute.xlu1 %1495 }
 0x2ff   :  { %v4751_v19 = vmul.f32 %v1522_v14, %v3652_v22  ;;  %v4754_v49 = vmul.f32 %v1523_v60, %v3654_v25  ;;  %5971 = vst [vmem:[#allocation3_spill] sm:$0xff] %v4757_v58  ;;  %v1524_v2 = vmax.f32 %v1506_v9, 0.0  ;;  %v4818_v37 = vmul.f32 %v1519_v39, %v3675_v43 }
 0x300   :  { %v4760_v55 = vmul.f32 %v1527_v44, %v3659_v30  ;;  %v3266_v0 = vpack.i.bf16 %v4797_v47, %v4748_v24  ;;  %v4821_v18 = vmul.f32 %v1520_v13, %v3656_v26 }
 0x301   :  { %v4764_v51 = vpack.i.bf16 %v4754_v49, %v4748_v24  ;;  %v4768_v12 = vpack.i.bf16 %v4751_v19, %v4745_v57  ;;  %v3246_v32 = vpack.i.bf16 %v4754_v49, %v4745_v57  ;;  %v3211_v63 = vpack.i.bf16 %v4751_v19, %v4757_v58 }
 0x302   :  { %5972 = vst [vmem:[#allocation4_spill] sm:$0xff] %v4760_v55  ;;  %v4779_v53 = vpack.i.bf16 %v4760_v55, %v4757_v58  ;;  %v4815_v1 = vmul.f32 %v1524_v2, %v3690_v50  ;;  %5974 = vst [vmem:[#allocation6_spill] sm:$0xff] %v4821_v18  ;;  %v4826_v28 = vpack.i.bf16 %v4821_v18, %v4818_v37 }
 0x303   :  { %3197 = vrot.lane.b32.xlu1 %v4764_v51, %s3522_s1  ;;  %3192 = vrot.lane.b32.xlu0 %v4768_v12, %s3522_s1 }
 0x304   :  { %5973 = vst [vmem:[#allocation5_spill] sm:$0xff] %v4815_v1  ;;  %v4830_v52 = vpack.i.bf16 %v4815_v1, %v4797_v47 }
 0x307   :  { %3222 = vrot.lane.b32.xlu1 %v4764_v51, %s3524_s13  ;;  %3202 = vrot.lane.b32.xlu0 %v4779_v53, %s3522_s1 }
 0x30b   :  { %3247 = vrot.lane.b32.xlu1 %v3246_v32, %s3526_s15  ;;  %3207 = vrot.lane.b32.xlu0 %v3206_v27, %s3523_s12 }
 0x30f   :  { %3252 = vrot.lane.b32.xlu1 %v4764_v51, %s3528_s17  ;;  %3212 = vrot.lane.b32.xlu0 %v3211_v63, %s3523_s12 }
 0x313   :  { %3262 = vrot.lane.b32.xlu1 %v4768_v12, %s3528_s17  ;;  %3217 = vrot.lane.b32.xlu0 %v4768_v12, %s3524_s13 }
 0x317   :  { %3267 = vrot.lane.b32.xlu1 %v3266_v0, %s3527_s16  ;;  %3227 = vrot.lane.b32.xlu0 %v4779_v53, %s3524_s13 }
 0x31b   :  { %3272 = vrot.lane.b32.xlu1 %v3246_v32, %s3527_s16  ;;  %3232 = vrot.lane.b32.xlu0 %v3206_v27, %s3525_s14 }
 0x31f   :  { %3237 = vrot.lane.b32.xlu0 %v3211_v63, %s3525_s14 }
 0x323   :  { %3242 = vrot.lane.b32.xlu0 %v3266_v0, %s3526_s15 }
 0x327   :  { %3257 = vrot.lane.b32.xlu0 %v4830_v52, %s3528_s17 }
 0x375   :  { %v4838_v11 = vpop.permute.xlu1 %3197  ;;  %v3193_v61 = vpop.permute.xlu0 %3192 }
 0x376   :  { %v5899_v21 = vunpack.i.h.bf16 %v4838_v11  ;;  %v5897_v46 = vunpack.i.l.bf16 %v4838_v11  ;;  %v3195_v62 = vunpack.i.h.bf16 %v3193_v61  ;;  %v3194_v36 = vunpack.i.l.bf16 %v3193_v61 }
 0x378   :  { %v1600_v17 = vsel %vm129_vm0, %v3194_v36, %v5897_v46  ;;  %v1601_v38 = vsel %vm129_vm0, %v3195_v62, %v5899_v21 }
 0x379   :  { %v4850_v56 = vpop.permute.xlu1 %3222  ;;  %v4852_v35 = vpop.permute.xlu0 %3202  ;;  %v2708_v8 = vpack.c.bf16 %v1601_v38, %v1600_v17 }
 0x37a   :  { %v5894_v10 = vunpack.i.h.bf16 %v4852_v35  ;;  %v5893_v48 = vunpack.i.l.bf16 %v4852_v35 }
 0x37b   :  { %2709 = vmatprep.subr.bf16.mxu0 %v2708_v8 }
 0x37c   :  { %v1603_v54 = vsel %vm129_vm0, %v5893_v48, %v3194_v36  ;;  %v1604_v7 = vsel %vm129_vm0, %v5894_v10, %v3195_v62 }
 0x37d   :  { %v2710_v42 = vpack.c.bf16 %v1604_v7, %v1603_v54  ;;  %v4864_v45 = vpop.permute.xlu1 %3247 }
 0x37e   :  { %5975 = vst [vmem:[#allocation7_spill] sm:$0xff] %v4864_v45 }
 0x37f   :  { %2711 = vmatpush1.bf16.msra.mxu0 %v2710_v42 }
 0x381   :  { %v4866_v3 = vpop.permute.xlu1 %3252 }
 0x382   :  { %v5898_v4 = vunpack.i.h.bf16 %v4866_v3  ;;  %v5900_v16 = vunpack.i.l.bf16 %v4866_v3 }
 0x385   :  { %v4868_v6 = vpop.permute.xlu1 %3262 }
 0x386   :  { %5976 = vst [vmem:[#allocation8_spill] sm:$0xff] %v4868_v6  ;;  %v5891_v14 = vunpack.i.h.bf16 %v4868_v6  ;;  %v5892_v60 = vunpack.i.l.bf16 %v4868_v6 }
 0x388   :  { %v4880_v44 = vsel %vm260_vm5, %v5891_v14, %v5898_v4  ;;  %v4888_v33 = vsel %vm260_vm5, %v5892_v60, %v5900_v16 }
 0x38e   :  { %v1273_v27 = vpop.f32.mrb[4].mxu1 }
 0x38f   :  { %v1274_v31 = vadd.f32 %v1273_v27, %v4709_v5  ;;  %v1275_v32 = vpop.f32.mrb[5].mxu1 }
 0x390   :  { %v1276_v63 = vadd.f32 %v1275_v32, %v4709_v5 }
 0x391   :  { %1420 = vst [vmem:[%s5863_s8 + $0x60] sm:$0xff] %v1274_v31  ;;  %v1477_v15 = vmul.f32 %v4836_v20, %v1274_v31 }
 0x392   :  { %1421 = vst [vmem:[%s5863_s8 + $0x68] sm:$0xff] %v1276_v63  ;;  %v1478_v29 = vmul.f32 %v4836_v20, %v1276_v63 }
 0x393   :  { %v1510_v0 = vadd.f32 %v4834_v23, %v1477_v15 }
 0x394   :  { %v1511_v2 = vadd.f32 %v4834_v23, %v1478_v29 }
 0x395   :  { %v1528_v9 = vmax.f32 %v1510_v0, 0.0 }
 0x396   :  { %v1529_v13 = vmax.f32 %v1511_v2, 0.0 }
 0x397   :  { %v4905_v39 = vmul.f32 %v1528_v9, %v3652_v22 }
 0x398   :  { %v4912_v62 = vmul.f32 %v1529_v13, %v3654_v25 }
 0x399   :  { %1862 = vrot.lane.b32.xlu0 %v4905_v39, %s3526_s15  ;;  %v3276_v61 = vpack.i.bf16 %v4754_v49, %v4905_v39 }
 0x39a   :  { %v3291_v22 = vpack.i.bf16 %v4760_v55, %v4912_v62  ;;  %v3286_v36 = vpack.i.bf16 %v4912_v62, %v4905_v39  ;;  %v3306_v25 = vpack.i.bf16 %v4815_v1, %v4912_v62 }
 0x39b   :  { %3277 = vrot.lane.b32.xlu1 %v3276_v61, %s3523_s12 }
 0x39d   :  { %1934 = vrot.lane.b32.xlu0 %v4905_v39, %s3528_s17 }
 0x39f   :  { %3282 = vrot.lane.b32.xlu1 %v3276_v61, %s3525_s14 }
 0x3a1   :  { %3292 = vrot.lane.b32.xlu0 %v3291_v22, %s3523_s12 }
 0x3a3   :  { %3287 = vrot.lane.b32.xlu1 %v3286_v36, %s3522_s1 }
 0x3a5   :  { %3302 = vrot.lane.b32.xlu0 %v3291_v22, %s3525_s14 }
 0x3a7   :  { %3297 = vrot.lane.b32.xlu1 %v3286_v36, %s3524_s13 }
 0x3a9   :  { %3307 = vrot.lane.b32.xlu0 %v3306_v25, %s3526_s15 }
 0x3ad   :  { %3312 = vrot.lane.b32.xlu0 %v3306_v25, %s3527_s16 }
 0x3b3   :  { %v1415_v17 = vpop.f32.mrb[6].mxu1 }
 0x3b4   :  { %v1416_v38 = vadd.f32 %v1415_v17, %v4709_v5  ;;  %v1417_v8 = vpop.f32.mrb[7].mxu1  ;;  %v3366_v17 = vpack.i.bf16 %v4818_v37, %v4815_v1 }
 0x3b5   :  { %v1418_v54 = vadd.f32 %v1417_v8, %v4709_v5 }
 0x3b6   :  { %1424 = vst [vmem:[%s5863_s8 + $0x80] sm:$0xff] %v1416_v38  ;;  %v1481_v36 = vmul.f32 %v4836_v20, %v1416_v38 }
 0x3b7   :  { %1425 = vst [vmem:[%s5863_s8 + $0x88] sm:$0xff] %v1418_v54  ;;  %v1482_v7 = vmul.f32 %v4836_v20, %v1418_v54 }
 0x3b8   :  { %v1514_v54 = vadd.f32 %v4834_v23, %v1481_v36 }
 0x3b9   :  { %v1515_v15 = vadd.f32 %v4834_v23, %v1482_v7 }
 0x3bb   :  { %v1533_v29 = vmax.f32 %v1515_v15, 0.0 }
 0x3d0   :  { %v1344_v42 = vpop.f32.mrb[2].mxu0 }
 0x3d1   :  { %v1345_v27 = vadd.f32 %v1344_v42, %v4709_v5  ;;  %v1346_v31 = vpop.f32.mrb[3].mxu0 }
 0x3d2   :  { %v1347_v32 = vadd.f32 %v1346_v31, %v4709_v5  ;;  %v4954_v5 = vmul.f32 %v1533_v29, %v3659_v30 }
 0x3d3   :  { %1422 = vst [vmem:[%s5863_s8 + $0x70] sm:$0xff] %v1345_v27  ;;  %v1479_v63 = vmul.f32 %v4836_v20, %v1345_v27 }
 0x3d4   :  { %1423 = vst [vmem:[%s5863_s8 + $0x78] sm:$0xff] %v1347_v32  ;;  %5978 = vst [vmem:[#allocation10_spill] sm:$0xff] %v4954_v5  ;;  %v3326_v22 = vpack.i.bf16 %v4797_v47, %v4954_v5  ;;  %v1480_v30 = vmul.f32 %v4836_v20, %v1347_v32  ;;  %v1532_v20 = vmax.f32 %v1514_v54, 0.0 }
 0x3d5   :  { %v1512_v0 = vadd.f32 %v4834_v23, %v1479_v63 }
 0x3d6   :  { %v1513_v25 = vadd.f32 %v4834_v23, %v1480_v30  ;;  %v4990_v7 = vmul.f32 %v1532_v20, %v3656_v26  ;;  %v1525_v23 = vmax.f32 %v4739_v41, 0.0 }
 0x3d7   :  { %v1530_v9 = vmax.f32 %v1512_v0, 0.0  ;;  %v5043_v0 = vld [vmem:[%s5868_s7 + $0x8] sm:$0xff] }
 0x3d8   :  { %5981 = vst [vmem:[#allocation13_spill] sm:$0xff] %v4990_v7  ;;  %2549 = vmatprep.mubr.msk.f32.mxu0 %vm2316_vm10, %v5043_v0  ;;  %2550 = vmatprep.mubr.msk.f32.mxu1 %vm2316_vm10, %v5043_v0  ;;  %v3461_v30 = vpack.i.bf16 %v4760_v55, %v4990_v7  ;;  %v5989_v55 = vunpack.i.h.bf16 %v4850_v56 }
 0x3d9   :  { %v4951_v2 = vmul.f32 %v1530_v9, %v3690_v50  ;;  %v1526_v50 = vmax.f32 %v4742_v40, 0.0  ;;  %v1531_v40 = vmax.f32 %v1513_v25, 0.0 }
 0x3db   :  { %5977 = vst [vmem:[#allocation9_spill] sm:$0xff] %v4951_v2  ;;  %v3321_v13 = vpack.i.bf16 %v4951_v2, %v4912_v62  ;;  %v3316_v61 = vpack.i.bf16 %v4751_v19, %v4951_v2  ;;  %v4977_v8 = vmul.f32 %v1526_v50, %v3656_v26  ;;  %v4987_v38 = vmul.f32 %v1531_v40, %v3675_v43 }
 0x3dc   :  { %v5005_v26 = vmul.f32 %v1525_v23, %v3675_v43  ;;  %v3391_v27 = vpack.i.bf16 %v4951_v2, %v4815_v1  ;;  %v5018_v43 = vpop.permute.xlu0 %3207 }
 0x3dd   :  { %3322 = vrot.lane.b32.xlu0 %v3321_v13, %s3528_s17  ;;  %3317 = vrot.lane.b32.xlu1 %v3316_v61, %s3526_s15  ;;  %5979 = vst [vmem:[#allocation11_spill] sm:$0xff] %v4977_v8  ;;  %5980 = vst [vmem:[#allocation12_spill] sm:$0xff] %v4987_v38  ;;  %v4998_v42 = vpack.i.bf16 %v4990_v7, %v4987_v38  ;;  %v3401_v41 = vpack.i.bf16 %v4990_v7, %v4977_v8  ;;  %v3209_v50 = vunpack.i.l.bf16 %v5018_v43 }
 0x3de   :  { %v3371_v31 = vpack.i.bf16 %v4821_v18, %v5005_v26  ;;  %v3396_v63 = vpack.i.bf16 %v4987_v38, %v5005_v26  ;;  %v3451_v9 = vpack.i.bf16 %v5005_v26, %v4757_v58  ;;  %v3466_v20 = vpack.i.bf16 %v5005_v26, %v4818_v37 }
 0x3e1   :  { %2006 = vrot.lane.b32.xlu0 %v4905_v39, %s3527_s16  ;;  %3327 = vrot.lane.b32.xlu1 %v3326_v22, %s3522_s1 }
 0x3e5   :  { %3357 = vrot.lane.b32.xlu0 %v4830_v52, %s3530_s18  ;;  %3332 = vrot.lane.b32.xlu1 %v3326_v22, %s3523_s12  ;;  %v3376_v52 = vpack.i.bf16 %v4951_v2, %v4977_v8 }
 0x3e9   :  { %3367 = vrot.lane.b32.xlu0 %v3366_v17, %s3522_s1  ;;  %3337 = vrot.lane.b32.xlu1 %v3316_v61, %s3527_s16 }
 0x3ed   :  { %3377 = vrot.lane.b32.xlu0 %v3376_v52, %s3522_s1  ;;  %3342 = vrot.lane.b32.xlu1 %v3326_v22, %s3524_s13 }
 0x3f1   :  { %2090 = vrot.lane.b32.xlu0 %v4951_v2, %s3530_s18  ;;  %3347 = vrot.lane.b32.xlu1 %v3326_v22, %s3525_s14  ;;  %v5896_v22 = vunpack.i.h.bf16 %v5018_v43 }
 0x3f5   :  { %3382 = vrot.lane.b32.xlu0 %v4998_v42, %s3522_s1  ;;  %3352 = vrot.lane.b32.xlu1 %v4764_v51, %s3530_s18  ;;  %v5023_v51 = vpop.permute.xlu1 %3267 }
 0x3f9   :  { %3392 = vrot.lane.b32.xlu0 %v3391_v27, %s3523_s12  ;;  %3362 = vrot.lane.b32.xlu1 %v4768_v12, %s3530_s18  ;;  %v5025_v12 = vpop.permute.xlu0 %3212  ;;  %v5031_v32 = vpop.permute.xlu1 %3272 }
 0x3fa   :  { %v3215_v34 = vunpack.i.h.bf16 %v5025_v12 }
 0x3fd   :  { %3402 = vrot.lane.b32.xlu0 %v3401_v41, %s3523_s12  ;;  %3372 = vrot.lane.b32.xlu1 %v3371_v31, %s3522_s1  ;;  %v5036_v15 = vpop.permute.xlu0 %3217 }
 0x3fe   :  { %v3220_v46 = vunpack.i.h.bf16 %v5036_v15  ;;  %v3219_v4 = vunpack.i.l.bf16 %v5036_v15  ;;  %v5911_v15 = vunpack.i.l.bf16 %v4850_v56 }
 0x401   :  { %3412 = vrot.lane.b32.xlu0 %v3371_v31, %s3524_s13  ;;  %2084 = vrot.lane.b32.xlu1 %v4912_v62, %s3530_s18  ;;  %v5055_v13 = vpop.permute.xlu0 %3227  ;;  %v3456_v31 = vpack.i.bf16 %v4977_v8, %v4987_v38 }
 0x405   :  { %3422 = vrot.lane.b32.xlu0 %v4998_v42, %s3524_s13  ;;  %2078 = vrot.lane.b32.xlu1 %v4905_v39, %s3530_s18  ;;  %v5075_v40 = vpop.permute.xlu0 %3232 }
 0x409   :  { %3432 = vrot.lane.b32.xlu0 %v3391_v27, %s3525_s14  ;;  %3387 = vrot.lane.b32.xlu1 %v4826_v28, %s3523_s12  ;;  %v5086_v27 = vpop.permute.xlu0 %3237 }
 0x40d   :  { %3442 = vrot.lane.b32.xlu0 %v3401_v41, %s3525_s14  ;;  %3397 = vrot.lane.b32.xlu1 %v3396_v63, %s3523_s12  ;;  %v5051_v29 = vpop.permute.xlu1 %3277  ;;  %v5094_v41 = vpop.permute.xlu0 %3242 }
 0x40e   :  { %5982 = vst [vmem:[#allocation14_spill] sm:$0xff] %v5094_v41  ;;  %v3279_v48 = vunpack.i.l.bf16 %v5051_v29  ;;  %v3244_v1 = vunpack.i.l.bf16 %v5094_v41 }
 0x411   :  { %3452 = vrot.lane.b32.xlu0 %v3451_v9, %s3526_s15  ;;  %3407 = vrot.lane.b32.xlu1 %v3366_v17, %s3524_s13  ;;  %v5059_v61 = vpop.permute.xlu1 %3282  ;;  %v1672_v17 = vsel %vm154_vm1, %v3209_v50, %v5896_v22 }
 0x415   :  { %3462 = vrot.lane.b32.xlu0 %v3461_v30, %s3526_s15  ;;  %3417 = vrot.lane.b32.xlu1 %v3376_v52, %s3524_s13  ;;  %v5067_v36 = vpop.permute.xlu1 %3287 }
 0x416   :  { %v5895_v25 = vunpack.i.h.bf16 %v5067_v36  ;;  %v3289_v54 = vunpack.i.l.bf16 %v5067_v36 }
 0x418   :  { %v1602_v52 = vsel %vm129_vm0, %v3289_v54, %v5895_v25 }
 0x419   :  { %3467 = vrot.lane.b32.xlu0 %v3466_v20, %s3528_s17  ;;  %3427 = vrot.lane.b32.xlu1 %v4826_v28, %s3525_s14  ;;  %v2712_v23 = vpack.c.bf16 %v1672_v17, %v1602_v52  ;;  %v3471_v17 = vpack.i.bf16 %v4977_v8, %v4821_v18  ;;  %v5102_v52 = vpop.permute.xlu0 %3257  ;;  %v5988_v18 = vunpack.i.h.bf16 %v5051_v29 }
 0x41a   :  { %5983 = vst [vmem:[#allocation15_spill] sm:$0xff] %v5102_v52 }
 0x41b   :  { %2713 = vmatprep.subr.bf16.mxu0 %v2712_v23 }
 0x41d   :  { %3477 = vrot.lane.b32.xlu0 %v4779_v53, %s3528_s17  ;;  %3437 = vrot.lane.b32.xlu1 %v3396_v63, %s3525_s14  ;;  %v5107_v63 = vpop.permute.xlu0 %1862 }
 0x41e   :  { %5984 = vst [vmem:[#allocation16_spill] sm:$0xff] %v5107_v63 }
 0x421   :  { %3492 = vrot.lane.b32.xlu0 %v3451_v9, %s3527_s16  ;;  %3447 = vrot.lane.b32.xlu1 %v4826_v28, %s3526_s15  ;;  %v5116_v9 = vpop.permute.xlu0 %1934 }
 0x425   :  { %3502 = vrot.lane.b32.xlu0 %v3461_v30, %s3527_s16  ;;  %3457 = vrot.lane.b32.xlu1 %v3456_v31, %s3526_s15  ;;  %v2310_v30 = vld [vmem:[%s5865_s4] sm:$0xff] }
 0x429   :  { %1964 = vrot.lane.b32.xlu0 %v4954_v5, %s3528_s17  ;;  %3472 = vrot.lane.b32.xlu1 %v3471_v17, %s3528_s17 }
 0x42d   :  { %3507 = vrot.lane.b32.xlu0 %v3466_v20, %s3530_s18  ;;  %3482 = vrot.lane.b32.xlu1 %v4998_v42, %s3528_s17  ;;  %v5125_v20 = vpop.permute.xlu0 %3292 }
 0x42e   :  { %v5906_v14 = vunpack.i.l.bf16 %v5125_v20 }
 0x430   :  { %v1674_v21 = vsel %vm154_vm1, %v3279_v48, %v5906_v14 }
 0x431   :  { %3517 = vrot.lane.b32.xlu0 %v4779_v53, %s3530_s18  ;;  %1892 = vrot.lane.b32.xlu1 %v4954_v5, %s3526_s15  ;;  %v5130_v53 = vpop.permute.xlu0 %3302 }
 0x435   :  { %2102 = vrot.lane.b32.xlu0 %v4990_v7, %s3530_s18  ;;  %3487 = vrot.lane.b32.xlu1 %v4826_v28, %s3527_s16  ;;  %v5133_v42 = vpop.permute.xlu0 %3307  ;;  %v5139_v28 = vpop.permute.xlu1 %3297 }
 0x436   :  { %5985 = vst [vmem:[#allocation17_spill] sm:$0xff] %v5133_v42 }
 0x439   :  { %2313 = vperm.xlu0 %3190, %v2310_v30   ;;  %3497 = vrot.lane.b32.xlu1 %v3456_v31, %s3527_s16  ;;  %v5141_v23 = vpop.permute.xlu0 %3312 }
 0x43d   :  { %2036 = vrot.lane.b32.xlu1 %v4954_v5, %s3527_s16 }
 0x441   :  { %3512 = vrot.lane.b32.xlu1 %v3471_v17, %s3530_s18  ;;  %v5908_v17 = vunpack.i.l.bf16 %v5025_v12 }
 0x443   :  { %v1675_v16 = vsel %vm154_vm1, %v5908_v17, %v3209_v50  ;;  %v1673_v50 = vsel %vm154_vm1, %v3215_v34, %v5988_v18  ;;  %v1745_v18 = vsel %vm179_vm2, %v3220_v46, %v5989_v55  ;;  %v5990_v17 = vunpack.i.h.bf16 %v5125_v20 }
 0x444   :  { %v5991_v55 = vunpack.i.l.bf16 %v5055_v13 }
 0x445   :  { %2096 = vrot.lane.b32.xlu1 %v4987_v38, %s3530_s18 }
 0x446   :  { %v1747_v58 = vsel %vm179_vm2, %v5991_v55, %v3219_v4  ;;  %v5918_v55 = vunpack.i.h.bf16 %v5094_v41 }
 0x449   :  { %2108 = vrot.lane.b32.xlu1 %v4954_v5, %s3530_s18 }
 0x44f   :  { %v5143_v31 = vpop.permute.xlu0 %3322  ;;  %v5145_v30 = vpop.permute.xlu1 %3317 }
 0x450   :  { %5986 = vst [vmem:[#allocation18_spill] sm:$0xff] %v5145_v30 }
 0x453   :  { %v5151_v10 = vpop.permute.xlu0 %2006  ;;  %v5153_v25 = vpop.permute.xlu1 %3327 }
 0x454   :  { %v5909_v22 = vunpack.i.l.bf16 %v5153_v25 }
 0x456   :  { %v1605_v6 = vsel %vm129_vm0, %v5909_v22, %v3289_v54  ;;  %v2716_v22 = vpack.c.bf16 %v1674_v21, %v1673_v50  ;;  %v1676_v21 = vsel %vm154_vm1, %v5990_v17, %v3215_v34  ;;  %v5992_v34 = vunpack.i.h.bf16 %v5055_v13 }
 0x457   :  { %v2714_v5 = vpack.c.bf16 %v1675_v16, %v1605_v6  ;;  %v5174_v8 = vpop.permute.xlu0 %3357  ;;  %v5176_v14 = vpop.permute.xlu1 %3332  ;;  %v3299_v6 = vunpack.i.l.bf16 %v5139_v28  ;;  %v1744_v16 = vsel %vm179_vm2, %v3219_v4, %v5911_v15  ;;  %v3284_v50 = vunpack.i.l.bf16 %v5059_v61 }
 0x458   :  { %5987 = vst [vmem:[#allocation19_spill] sm:$0xff] %v5174_v8  ;;  %v5914_v54 = vunpack.i.l.bf16 %v5176_v14  ;;  %v1748_v17 = vsel %vm179_vm2, %v5992_v34, %v3220_v46  ;;  %v2720_v2 = vpack.c.bf16 %v1745_v18, %v1744_v16  ;;  %v5994_v18 = vunpack.i.h.bf16 %v5075_v40 }
 0x459   :  { %2715 = vmatpush1.bf16.msra.mxu0 %v2714_v5  ;;  %v2722_v4 = vpack.c.bf16 %v1748_v17, %v1747_v58 }
 0x45a   :  { %v1677_v5 = vsel %vm154_vm1, %v5914_v54, %v3279_v48  ;;  %2717 = vmatprep.subr.bf16.mxu0 %v2716_v22  ;;  %v3234_v48 = vunpack.i.l.bf16 %v5075_v40  ;;  %v5915_v22 = vunpack.i.l.bf16 %v5130_v53  ;;  %v3240_v54 = vunpack.i.h.bf16 %v5086_v27 }
 0x45b   :  { %v2718_v7 = vpack.c.bf16 %v1677_v5, %v1676_v21  ;;  %v5204_v15 = vpop.permute.xlu0 %3367  ;;  %v5206_v60 = vpop.permute.xlu1 %3337  ;;  %v5993_v21 = vunpack.i.h.bf16 %v5139_v28 }
 0x45c   :  { %v1818_v58 = vsel %vm204_vm3, %v3284_v50, %v5915_v22  ;;  %v5996_v22 = vunpack.i.h.bf16 %v5059_v61 }
 0x45d   :  { %2719 = vmatpush1.bf16.msra.mxu0 %v2718_v7  ;;  %v1746_v5 = vsel %vm179_vm2, %v3299_v6, %v5993_v21  ;;  %v1816_v7 = vsel %vm204_vm3, %v3234_v48, %v5994_v18 }
 0x45e   :  { %2721 = vmatprep.subr.bf16.mxu0 %v2720_v2  ;;  %v2724_v21 = vpack.c.bf16 %v1816_v7, %v1746_v5  ;;  %v5995_v2 = vunpack.i.l.bf16 %v5086_v27  ;;  %v1817_v38 = vsel %vm204_vm3, %v3240_v54, %v5996_v22 }
 0x45f   :  { %v5225_v46 = vpop.permute.xlu0 %3377  ;;  %v5227_v16 = vpop.permute.xlu1 %3342 }
 0x460   :  { %v5920_v34 = vunpack.i.l.bf16 %v5227_v16  ;;  %v1819_v17 = vsel %vm204_vm3, %v5995_v2, %v3234_v48  ;;  %v2728_v2 = vpack.c.bf16 %v1818_v58, %v1817_v38  ;;  %v2732_v58 = vpack.c.bf16 %v4754_v49, %v4748_v24 }
 0x461   :  { %2723 = vmatpush1.bf16.msra.mxu0 %v2722_v4  ;;  %v2734_v24 = vpack.c.bf16 %v4751_v19, %v4745_v57 }
 0x462   :  { %v1749_v5 = vsel %vm179_vm2, %v5920_v34, %v3299_v6  ;;  %2725 = vmatprep.subr.bf16.mxu0 %v2724_v21  ;;  %v5997_v6 = vunpack.i.h.bf16 %v5130_v53  ;;  %v5999_v34 = vunpack.i.h.bf16 %v5133_v42 }
 0x463   :  { %v2726_v18 = vpack.c.bf16 %v1819_v17, %v1749_v5  ;;  %v5248_v4 = vpop.permute.xlu0 %2090  ;;  %v5250_v7 = vpop.permute.xlu1 %3347 }
 0x464   :  { %v5919_v48 = vunpack.i.l.bf16 %v5250_v7  ;;  %v1820_v21 = vsel %vm204_vm3, %v5997_v6, %v3240_v54  ;;  %v1903_v54 = vsel %vm235_vm4, %v3244_v1, %v5918_v55  ;;  %v5921_v6 = vunpack.i.l.bf16 %v4864_v45 }
 0x465   :  { %2727 = vmatpush1.bf16.msra.mxu0 %v2726_v18  ;;  %v5922_v18 = vunpack.i.l.bf16 %v5145_v30  ;;  %v2736_v55 = vpack.c.bf16 %v1903_v54, %v4912_v62 }
 0x466   :  { %v1821_v17 = vsel %vm204_vm3, %v5919_v48, %v3284_v50  ;;  %2729 = vmatprep.subr.bf16.mxu0 %v2728_v2  ;;  %v3309_v2 = vunpack.i.l.bf16 %v5133_v42  ;;  %v1906_v49 = vsel %vm235_vm4, %v5921_v6, %v3244_v1  ;;  %v3250_v48 = vunpack.i.h.bf16 %v4864_v45 }
 0x467   :  { %v2730_v22 = vpack.c.bf16 %v1821_v17, %v1820_v21  ;;  %v5267_v5 = vpop.permute.xlu0 %3382  ;;  %v5269_v38 = vpop.permute.xlu1 %3352  ;;  %v3369_v50 = vunpack.i.l.bf16 %v5204_v15  ;;  %v2738_v1 = vpack.c.bf16 %v1906_v49, %v4905_v39  ;;  %v3330_v6 = vunpack.i.h.bf16 %v5153_v25 }
 0x468   :  { %v1905_v57 = vsel %vm235_vm4, %v3309_v2, %v5922_v18  ;;  %v6000_v39 = vunpack.i.l.bf16 %v4866_v3  ;;  %v3324_v42 = vunpack.i.l.bf16 %v5143_v31 }
 0x469   :  { %2731 = vmatpush1.bf16.msra.mxu0 %v2730_v22  ;;  %v5928_v22 = vunpack.i.l.bf16 %v5102_v52 }
 0x46a   :  { %2733 = vmatprep.subr.bf16.mxu0 %v2732_v58  ;;  %v5927_v58 = vunpack.i.h.bf16 %v5145_v30 }
 0x46b   :  { %v5281_v21 = vpop.permute.xlu0 %3392  ;;  %v5283_v17 = vpop.permute.xlu1 %3362  ;;  %v1975_v49 = vsel %vm260_vm5, %v6000_v39, %v5928_v22  ;;  %v1908_v39 = vsel %vm235_vm4, %v5107_v63, %v3309_v2  ;;  %v6004_v22 = vunpack.i.h.bf16 %v5204_v15  ;;  %v5936_v63 = vunpack.i.h.bf16 %v5141_v23 }
 0x46c   :  { %5998 = vst [vmem:[#allocation20_spill] sm:$0xff] %v5283_v17  ;;  %v1907_v18 = vsel %vm235_vm4, %v5927_v58, %v3250_v48 }
 0x46d   :  { %2735 = vmatpush1.bf16.msra.mxu0 %v2734_v24  ;;  %v1904_v24 = vsel %vm235_vm4, %v3250_v48, %v5999_v34  ;;  %v6001_v34 = vunpack.i.h.bf16 %v4838_v11  ;;  %v6002_v48 = vunpack.i.h.bf16 %v5102_v52 }
 0x46e   :  { %2737 = vmatprep.subr.bf16.mxu0 %v2736_v55  ;;  %v2740_v19 = vpack.c.bf16 %v1905_v57, %v1904_v24  ;;  %v6003_v57 = vunpack.i.h.bf16 %v4866_v3 }
 0x46f   :  { %v5304_v62 = vpop.permute.xlu0 %3402  ;;  %v5306_v54 = vpop.permute.xlu1 %3372  ;;  %v1598_v30 = vsel %vm129_vm0, %v6001_v34, %v3369_v50  ;;  %v1594_v34 = vsel %vm129_vm0, %v3330_v6, %v6004_v22  ;;  %v5935_v22 = vunpack.i.l.bf16 %v5031_v32 }
 0x470   :  { %v5933_v55 = vunpack.i.l.bf16 %v5306_v54  ;;  %v1976_v24 = vsel %vm260_vm5, %v6003_v57, %v6002_v48  ;;  %v2742_v48 = vpack.c.bf16 %v1908_v39, %v1907_v18  ;;  %v6005_v57 = vunpack.i.l.bf16 %v4838_v11 }
 0x471   :  { %2739 = vmatpush1.bf16.msra.mxu0 %v2738_v1  ;;  %v3269_v1 = vunpack.i.l.bf16 %v5023_v51  ;;  %v2744_v41 = vpack.c.bf16 %v1976_v24, %v1975_v49  ;;  %v6006_v11 = vunpack.i.h.bf16 %v5143_v31  ;;  %v1980_v39 = vsel %vm260_vm5, %v5116_v9, %v3324_v42 }
 0x472   :  { %2741 = vmatprep.subr.bf16.mxu0 %v2740_v19  ;;  %v1595_v3 = vsel %vm129_vm0, %v3369_v50, %v5933_v55  ;;  %v1597_v58 = vsel %vm129_vm0, %v6005_v57, %v3330_v6  ;;  %v5934_v50 = vunpack.i.l.bf16 %v5206_v60  ;;  %v3275_v6 = vunpack.i.h.bf16 %v5031_v32 }
 0x473   :  { %v5352_v2 = vpop.permute.xlu0 %3412  ;;  %v5354_v19 = vpop.permute.xlu1 %2084  ;;  %v2760_v45 = vpack.c.bf16 %v1595_v3, %v1594_v34  ;;  %v2762_v52 = vpack.c.bf16 %v1598_v30, %v1597_v58  ;;  %v1977_v18 = vsel %vm260_vm5, %v3324_v42, %v6006_v11  ;;  %v3314_v30 = vunpack.i.l.bf16 %v5141_v23 }
 0x474   :  { %v3335_v58 = vunpack.i.h.bf16 %v5176_v14  ;;  %v5937_v49 = vunpack.i.h.bf16 %v5206_v60  ;;  %v6007_v34 = vunpack.i.h.bf16 %v5023_v51  ;;  %v3355_v11 = vunpack.i.h.bf16 %v5269_v38 }
 0x475   :  { %2743 = vmatpush1.bf16.msra.mxu0 %v2742_v48  ;;  %2761 = vmatprep.subr.bf16.mxu1 %v2760_v45  ;;  %v2048_v48 = vsel %vm285_vm6, %v3275_v6, %v5936_v63  ;;  %v3354_v55 = vunpack.i.l.bf16 %v5269_v38  ;;  %v6009_v38 = vunpack.i.h.bf16 %v5018_v43  ;;  %v6010_v43 = vunpack.i.h.bf16 %v5067_v36 }
 0x476   :  { %2745 = vmatprep.subr.bf16.mxu0 %v2744_v41  ;;  %2763 = vmatpush1.bf16.msra.mxu1 %v2762_v52  ;;  %v2047_v3 = vsel %vm285_vm6, %v3269_v1, %v6007_v34  ;;  %v2050_v41 = vsel %vm285_vm6, %v5935_v22, %v3269_v1  ;;  %v3380_v52 = vunpack.i.h.bf16 %v5225_v46  ;;  %v6008_v34 = vpack.c.bf16 %v4880_v44, %v4888_v33 }
 0x477   :  { %v5370_v45 = vpop.permute.xlu0 %3422  ;;  %v5372_v24 = vpop.permute.xlu1 %2078  ;;  %v2748_v42 = vpack.c.bf16 %v2047_v3, %v1977_v18  ;;  %v2750_v57 = vpack.c.bf16 %v2050_v41, %v1980_v39  ;;  %v2049_v1 = vsel %vm285_vm6, %v3314_v30, %v5934_v50  ;;  %v2052_v18 = vsel %vm285_vm6, %v5151_v10, %v3314_v30 }
 0x478   :  { %v5939_v3 = vunpack.i.h.bf16 %v5174_v8  ;;  %v5938_v39 = vunpack.i.l.bf16 %v5174_v8  ;;  %v1669_v44 = vsel %vm154_vm1, %v6009_v38, %v3335_v58  ;;  %v2051_v33 = vsel %vm285_vm6, %v5937_v49, %v3275_v6 }
 0x479   :  { %2747 = vmatpush1.bf16.msra.mxu0 %v6008_v34  ;;  %v5941_v30 = vunpack.i.l.bf16 %v5283_v17  ;;  %v1599_v38 = vsel %vm129_vm0, %v6010_v43, %v3380_v52  ;;  %v2752_v41 = vpack.c.bf16 %v2049_v1, %v2048_v48  ;;  %v3345_v6 = vunpack.i.h.bf16 %v5227_v16 }
 0x47a   :  { %2749 = vmatprep.subr.bf16.mxu0 %v2748_v42  ;;  %v3379_v42 = vunpack.i.l.bf16 %v5225_v46  ;;  %v3394_v49 = vunpack.i.l.bf16 %v5281_v21  ;;  %v2119_v34 = vsel %vm310_vm7, %v3354_v55, %v5938_v39  ;;  %v2120_v36 = vsel %vm310_vm7, %v3355_v11, %v5939_v3 }
 0x47b   :  { %v5412_v50 = vpop.permute.xlu0 %3432  ;;  %v5414_v22 = vpop.permute.xlu1 %3387  ;;  %v2754_v46 = vpack.c.bf16 %v2052_v18, %v2051_v33  ;;  %v3395_v43 = vunpack.i.h.bf16 %v5281_v21  ;;  %v6011_v48 = vunpack.i.l.bf16 %v5267_v5  ;;  %v2766_v39 = vpack.c.bf16 %v1669_v44, %v1599_v38 }
 0x47c   :  { %v5940_v63 = vunpack.i.l.bf16 %v5414_v22  ;;  %v2122_v3 = vsel %vm310_vm7, %v5941_v30, %v3354_v55  ;;  %v6012_v18 = vunpack.i.h.bf16 %v5283_v17  ;;  %v2756_v38 = vpack.c.bf16 %v2120_v36, %v2119_v34 }
 0x47d   :  { %2751 = vmatpush1.bf16.msra.mxu0 %v2750_v57  ;;  %v1596_v1 = vsel %vm129_vm0, %v3380_v52, %v6011_v48  ;;  %v3375_v48 = vunpack.i.h.bf16 %v5306_v54  ;;  %v6014_v30 = vunpack.i.h.bf16 %v5051_v29  ;;  %v6016_v34 = vunpack.i.l.bf16 %v5125_v20 }
 0x47e   :  { %2753 = vmatprep.subr.bf16.mxu0 %v2752_v41  ;;  %v1666_v57 = vsel %vm154_vm1, %v3335_v58, %v5940_v63  ;;  %v2123_v21 = vsel %vm310_vm7, %v6012_v18, %v3355_v11  ;;  %v6013_v63 = vunpack.i.l.bf16 %v4850_v56  ;;  %v3385_v18 = vunpack.i.h.bf16 %v5267_v5 }
 0x47f   :  { %v5449_v41 = vpop.permute.xlu0 %3442  ;;  %v5451_v33 = vpop.permute.xlu1 %3397  ;;  %v2764_v52 = vpack.c.bf16 %v1666_v57, %v1596_v1  ;;  %v1670_v11 = vsel %vm154_vm1, %v6014_v30, %v3394_v49  ;;  %v6015_v1 = vunpack.i.h.bf16 %v4852_v35  ;;  %v1671_v36 = vsel %vm154_vm1, %v6016_v34, %v3395_v43 }
 0x480   :  { %v5942_v44 = vunpack.i.l.bf16 %v5451_v33  ;;  %v1741_v55 = vsel %vm179_vm2, %v6013_v63, %v3345_v6  ;;  %v2758_v63 = vpack.c.bf16 %v2123_v21, %v2122_v3  ;;  %v3405_v30 = vunpack.i.h.bf16 %v5304_v62 }
 0x481   :  { %2755 = vmatpush1.bf16.msra.mxu0 %v2754_v46  ;;  %2765 = vmatprep.subr.bf16.mxu1 %v2764_v52  ;;  %v1589_v57 = vsel %vm129_vm0, %v3379_v42, %v6015_v1  ;;  %v3404_v46 = vunpack.i.l.bf16 %v5304_v62  ;;  %v3390_v52 = vunpack.i.h.bf16 %v5414_v22  ;;  %v6017_v34 = vunpack.i.h.bf16 %v5451_v33 }
 0x482   :  { %2757 = vmatprep.subr.bf16.mxu0 %v2756_v38  ;;  %2767 = vmatpush1.bf16.msra.mxu1 %v2766_v39  ;;  %v1667_v29 = vsel %vm154_vm1, %v3394_v49, %v5942_v44  ;;  %v6018_v39 = vunpack.i.h.bf16 %v5204_v15  ;;  %v6019_v21 = vunpack.i.l.bf16 %v5306_v54  ;;  %v3414_v8 = vunpack.i.l.bf16 %v5352_v2 }
 0x483   :  { %v5480_v1 = vpop.permute.xlu0 %3452  ;;  %v5482_v58 = vpop.permute.xlu1 %3407  ;;  %v1668_v3 = vsel %vm154_vm1, %v3395_v43, %v6017_v34  ;;  %v2121_v15 = vsel %vm310_vm7, %v5354_v19, %v5248_v4  ;;  %v6020_v43 = vunpack.i.l.bf16 %v4852_v35  ;;  %v2770_v34 = vpack.c.bf16 %v1671_v36, %v1670_v11 }
 0x484   :  { %v1591_v49 = vsel %vm129_vm0, %v6018_v39, %v3375_v48  ;;  %v1592_v62 = vsel %vm129_vm0, %v6019_v21, %v3379_v42  ;;  %v3410_v38 = vunpack.i.h.bf16 %v5482_v58  ;;  %v3409_v44 = vunpack.i.l.bf16 %v5482_v58 }
 0x485   :  { %2759 = vmatpush1.bf16.msra.mxu0 %v2758_v63  ;;  %v2768_v17 = vpack.c.bf16 %v1668_v3, %v1667_v29  ;;  %v1588_v54 = vsel %vm129_vm0, %v3375_v48, %v6020_v43  ;;  %v3350_v42 = vunpack.i.h.bf16 %v5250_v7  ;;  %v6021_v39 = vunpack.i.h.bf16 %v4850_v56  ;;  %v5525_v56 = vld [vmem:[%s5868_s7] sm:$0xff] }
 0x486   :  { %2372 = vmatprep.subr.mxu0 %v2121_v15  ;;  %v1738_v63 = vsel %vm179_vm2, %v3345_v6, %v3410_v38  ;;  %v2814_v29 = vpack.c.bf16 %v1592_v62, %v1591_v49  ;;  %v1739_v48 = vsel %vm179_vm2, %v3409_v44, %v3414_v8  ;;  %v6022_v11 = vunpack.i.l.bf16 %v5153_v25 }
 0x487   :  { %v1742_v21 = vsel %vm179_vm2, %v6021_v39, %v3409_v44  ;;  %2769 = vmatprep.subr.bf16.mxu1 %v2768_v17  ;;  %v5516_v35 = vpop.permute.xlu0 %3462  ;;  %v3418_v3 = vpop.permute.xlu1 %3417  ;;  %v6023_v17 = vunpack.i.l.bf16 %v5025_v12  ;;  %v2124_v44 = vsel %vm310_vm7, %v5372_v24, %v5354_v19  ;;  %v2812_v62 = vpack.c.bf16 %v1589_v57, %v1588_v54 }
 0x488   :  { %v1590_v6 = vsel %vm129_vm0, %v3385_v18, %v6022_v11  ;;  %v2774_v49 = vpack.c.bf16 %v1742_v21, %v1741_v55  ;;  %2771 = vmatpush1.bf16.msra.mxu1 %v2770_v34  ;;  %v6024_v15 = vunpack.i.h.bf16 %v5125_v20  ;;  %v3415_v43 = vunpack.i.h.bf16 %v5352_v2 }
 0x489   :  { %v1660_v36 = vsel %vm154_vm1, %v3390_v52, %v6023_v17  ;;  %v3420_v39 = vunpack.i.h.bf16 %v3418_v3  ;;  %2373 = vmatpush1.msra.mxu0 %v2124_v44  ;;  %v2772_v12 = vpack.c.bf16 %v1739_v48, %v1738_v63  ;;  %v6025_v11 = vunpack.i.l.bf16 %v5176_v14 }
 0x48a   :  { %v1661_v25 = vsel %vm154_vm1, %v3404_v46, %v6024_v15  ;;  %v6026_v19 = vunpack.i.l.bf16 %v5414_v22  ;;  %2385 = vmatmul.mubr.f32.vlgmr.msra.gmra.mrb[4].mxu0 %v5525_v56  ;;  %2813 = vmatprep.subr.bf16.mxu0 %v2812_v62  ;;  %v2816_v20 = vpack.c.bf16 %v1660_v36, %v1590_v6  ;;  %v6027_v57 = vunpack.i.h.bf16 %v5075_v40 }
 0x48b   :  { %v1662_v17 = vsel %vm154_vm1, %v3405_v30, %v6025_v11  ;;  %v6028_v34 = vunpack.i.l.bf16 %v5267_v5  ;;  %v3419_v21 = vunpack.i.l.bf16 %v3418_v3  ;;  %2773 = vmatprep.subr.bf16.mxu1 %v2772_v12  ;;  %v5561_v22 = vpop.permute.xlu0 %3467  ;;  %v3428_v63 = vpop.permute.xlu1 %3427  ;;  %2815 = vmatpush1.bf16.msra.mxu0 %v2814_v29  ;;  %v3434_v48 = vunpack.i.l.bf16 %v5412_v50 }
 0x48c   :  { %v1663_v55 = vsel %vm154_vm1, %v6026_v19, %v3390_v52  ;;  %v1813_v54 = vsel %vm204_vm3, %v6027_v57, %v3350_v42  ;;  %v3424_v52 = vunpack.i.l.bf16 %v5370_v45  ;;  %2775 = vmatpush1.bf16.msra.mxu1 %v2774_v49  ;;  %v3429_v40 = vunpack.i.l.bf16 %v3428_v63  ;;  %2817 = vmatprep.subr.bf16.mxu0 %v2816_v20 }
 0x48d   :  { %v1593_v14 = vsel %vm129_vm0, %v6028_v34, %v3385_v18  ;;  %v2820_v6 = vpack.c.bf16 %v1662_v17, %v1661_v25  ;;  %v3435_v36 = vunpack.i.h.bf16 %v5412_v50  ;;  %v6029_v44 = vunpack.i.h.bf16 %v5139_v28  ;;  %2551 = vmatprep.mubr.msk.f32.mxu0 %vm2316_vm10, %v5043_v0 }
 0x48e   :  { %v2818_v5 = vpack.c.bf16 %v1663_v55, %v1593_v14  ;;  %v6030_v3 = vunpack.i.l.bf16 %v5055_v13  ;;  %v6031_v49 = vunpack.i.h.bf16 %v5451_v33  ;;  %v6032_v50 = vunpack.i.l.bf16 %v5451_v33 }
 0x48f   :  { %v1743_v18 = vsel %vm179_vm2, %v6029_v44, %v3420_v39  ;;  %v1740_v15 = vsel %vm179_vm2, %v3420_v39, %v3424_v52  ;;  %v1810_v25 = vsel %vm204_vm3, %v3350_v42, %v3429_v40  ;;  %v3425_v12 = vunpack.i.h.bf16 %v5370_v45  ;;  %v5589_v0 = vpop.permute.xlu0 %3477  ;;  %v3438_v17 = vpop.permute.xlu1 %3437 }
 0x490   :  { %v1732_v29 = vsel %vm179_vm2, %v3415_v43, %v6030_v3  ;;  %v1665_v62 = vsel %vm154_vm1, %v6031_v49, %v3405_v30  ;;  %v1664_v28 = vsel %vm154_vm1, %v6032_v50, %v3404_v46  ;;  %v3430_v11 = vunpack.i.h.bf16 %v3428_v63  ;;  %2819 = vmatpush1.bf16.msra.mxu0 %v2818_v5 }
 0x491   :  { %v2776_v19 = vpack.c.bf16 %v1810_v25, %v1740_v15  ;;  %v6033_v30 = vunpack.i.h.bf16 %v5055_v13  ;;  %v6034_v46 = vunpack.i.h.bf16 %v5059_v61  ;;  %v2778_v55 = vpack.c.bf16 %v1813_v54, %v1743_v18  ;;  %2821 = vmatprep.subr.bf16.mxu0 %v2820_v6 }
 0x492   :  { %v3440_v42 = vunpack.i.h.bf16 %v3438_v17  ;;  %v3439_v20 = vunpack.i.l.bf16 %v3438_v17  ;;  %v6035_v45 = vunpack.i.l.bf16 %v5130_v53  ;;  %v3445_v34 = vunpack.i.h.bf16 %v5449_v41  ;;  %v6041_v17 = vld [vmem:[#allocation14_spill] sm:$0xff] }
 0x493   :  { %v1733_v33 = vsel %vm179_vm2, %v3419_v21, %v6033_v30  ;;  %v1814_v39 = vsel %vm204_vm3, %v6034_v46, %v3434_v48  ;;  %v3444_v13 = vunpack.i.l.bf16 %v5449_v41  ;;  %v2822_v14 = vpack.c.bf16 %v1665_v62, %v1664_v28  ;;  %2777 = vmatprep.subr.bf16.mxu1 %v2776_v19  ;;  %v5613_v5 = vpop.permute.xlu0 %3492  ;;  %v5615_v44 = vpop.permute.xlu1 %3447  ;;  %v6043_v30 = vld [vmem:[#allocation12_spill] sm:$0xff] }
 0x494   :  { %v1815_v57 = vsel %vm204_vm3, %v6035_v45, %v3435_v36  ;;  %v1736_v61 = vsel %vm179_vm2, %v3414_v8, %v3419_v21  ;;  %2779 = vmatpush1.bf16.msra.mxu1 %v2778_v55  ;;  %v2824_v54 = vpack.c.bf16 %v1733_v33, %v1732_v29  ;;  %v1811_v63 = vsel %vm204_vm3, %v3434_v48, %v3439_v20 }
 0x495   :  { %v1812_v6 = vsel %vm204_vm3, %v3435_v36, %v3440_v42  ;;  %2823 = vmatpush1.bf16.msra.mxu0 %v2822_v14  ;;  %v6036_v18 = vunpack.i.l.bf16 %v5086_v27  ;;  %v2782_v8 = vpack.c.bf16 %v1815_v57, %v1814_v39  ;;  %v1735_v21 = vsel %vm179_vm2, %v3410_v38, %v3415_v43 }
 0x496   :  { %v2780_v41 = vpack.c.bf16 %v1812_v6, %v1811_v63  ;;  %v3450_v48 = vunpack.i.h.bf16 %v5615_v44  ;;  %v3449_v36 = vunpack.i.l.bf16 %v5615_v44  ;;  %2825 = vmatprep.subr.bf16.mxu0 %v2824_v54  ;;  %v2826_v3 = vpack.c.bf16 %v1736_v61, %v1735_v21  ;;  %v6047_v21 = vld [vmem:[#allocation3_spill] sm:$0xff] }
 0x497   :  { %v1804_v2 = vsel %vm204_vm3, %v3430_v11, %v6036_v18  ;;  %v2784_v29 = vpack.c.bf16 %v5005_v26, %v4818_v37  ;;  %v6037_v27 = vunpack.i.l.bf16 %v5227_v16  ;;  %v1807_v58 = vsel %vm204_vm3, %v3429_v40, %v3430_v11  ;;  %v5645_v16 = vpop.permute.xlu1 %3457  ;;  %v6040_v40 = vld [vmem:[#allocation5_spill] sm:$0xff]  ;;  %v5655_v25 = vpop.permute.xlu0 %3502 }
 0x498   :  { %2781 = vmatprep.subr.bf16.mxu1 %v2780_v41  ;;  %v6038_v43 = vunpack.i.h.bf16 %v5130_v53  ;;  %v6039_v50 = vunpack.i.l.bf16 %v5250_v7  ;;  %v1737_v26 = vsel %vm179_vm2, %v3424_v52, %v3425_v12  ;;  %v2786_v28 = vpack.c.bf16 %v6040_v40, %v4797_v47  ;;  %v6045_v41 = vld [vmem:[#allocation18_spill] sm:$0xff] }
 0x499   :  { %v1734_v49 = vsel %vm179_vm2, %v3425_v12, %v6037_v27  ;;  %2783 = vmatpush1.bf16.msra.mxu1 %v2782_v8  ;;  %2827 = vmatpush1.bf16.msra.mxu0 %v2826_v3  ;;  %v1897_v53 = vsel %vm235_vm4, %v3449_v36, %v3450_v48  ;;  %v3455_v7 = vunpack.i.h.bf16 %v5480_v1  ;;  %v3464_v15 = vunpack.i.l.bf16 %v5516_v35  ;;  %v6049_v27 = vld [vmem:[#allocation17_spill] sm:$0xff] }
 0x49a   :  { %v2828_v38 = vpack.c.bf16 %v1804_v2, %v1734_v49  ;;  %v1805_v62 = vsel %vm204_vm3, %v3444_v13, %v6038_v43  ;;  %v1806_v37 = vsel %vm204_vm3, %v3445_v34, %v6039_v50  ;;  %2785 = vmatprep.subr.bf16.mxu1 %v2784_v29  ;;  %v3460_v52 = vunpack.i.h.bf16 %v5645_v16  ;;  %v6051_v43 = vld [vmem:[#allocation7_spill] sm:$0xff] }
 0x49b   :  { %v3459_v12 = vunpack.i.l.bf16 %v5645_v16  ;;  %v2830_v11 = vpack.c.bf16 %v1807_v58, %v1737_v26  ;;  %v6042_v19 = vunpack.i.h.bf16 %v6041_v17  ;;  %v2788_v33 = vpack.c.bf16 %v1897_v53, %v6043_v30  ;;  %v3473_v54 = vpop.permute.xlu1 %3472  ;;  %v6053_v26 = vld [vmem:[#allocation15_spill] sm:$0xff] }
 0x49c   :  { %2829 = vmatprep.subr.bf16.mxu0 %v2828_v38  ;;  %v2832_v46 = vpack.c.bf16 %v1806_v37, %v1805_v62  ;;  %v1809_v39 = vsel %vm204_vm3, %v3440_v42, %v3445_v34  ;;  %v1808_v55 = vsel %vm204_vm3, %v3439_v20, %v3444_v13  ;;  %v1898_v45 = vsel %vm235_vm4, %v3455_v7, %v3460_v52  ;;  %v6044_v20 = vld [vmem:[#allocation9_spill] sm:$0xff] }
 0x49d   :  { %v1900_v47 = vsel %vm235_vm4, %v6042_v19, %v3449_v36  ;;  %2787 = vmatpush1.bf16.msra.mxu1 %v2786_v28  ;;  %v1899_v57 = vsel %vm235_vm4, %v3459_v12, %v3464_v15  ;;  %v3454_v14 = vunpack.i.l.bf16 %v5480_v1  ;;  %v3470_v61 = vunpack.i.h.bf16 %v5561_v22  ;;  %2831 = vmatpush1.bf16.msra.mxu0 %v2830_v11  ;;  %v5684_v1 = vpop.permute.xlu0 %1964  ;;  %v6048_v36 = vld [vmem:[#allocation4_spill] sm:$0xff] }
 0x49e   :  { %2789 = vmatprep.subr.bf16.mxu1 %v2788_v33  ;;  %v3469_v42 = vunpack.i.l.bf16 %v5561_v22  ;;  %v2790_v34 = vpack.c.bf16 %v1900_v47, %v6044_v20  ;;  %v3475_v13 = vunpack.i.h.bf16 %v3473_v54  ;;  %v3474_v63 = vunpack.i.l.bf16 %v3473_v54  ;;  %2833 = vmatprep.subr.bf16.mxu0 %v2832_v46 }
 0x49f   :  { %v2834_v6 = vpack.c.bf16 %v1809_v39, %v1808_v55  ;;  %v6046_v18 = vunpack.i.l.bf16 %v6045_v41  ;;  %v2792_v8 = vpack.c.bf16 %v1899_v57, %v1898_v45  ;;  %v2836_v3 = vpack.c.bf16 %v6048_v36, %v6047_v21  ;;  %v5696_v38 = vpop.permute.xlu1 %3482  ;;  %v6058_v39 = vld [vmem:[#allocation10_spill] sm:$0xff] }
 0x4a0   :  { %v1969_v22 = vsel %vm260_vm5, %v3469_v42, %v3474_v63  ;;  %v1970_v29 = vsel %vm260_vm5, %v3470_v61, %v3475_v13  ;;  %v6050_v49 = vunpack.i.h.bf16 %v6049_v27  ;;  %v6052_v62 = vunpack.i.l.bf16 %v6051_v43 }
 0x4a1   :  { %v1902_v2 = vsel %vm235_vm4, %v6046_v18, %v3459_v12  ;;  %2791 = vmatpush1.bf16.msra.mxu1 %v2790_v34  ;;  %2835 = vmatpush1.bf16.msra.mxu0 %v2834_v6  ;;  %v3465_v37 = vunpack.i.h.bf16 %v5516_v35  ;;  %v6054_v40 = vunpack.i.h.bf16 %v6053_v26  ;;  %v6055_v12 = vld [vmem:[#allocation6_spill] sm:$0xff]  ;;  %v6057_v17 = vunpack.i.l.bf16 %v6053_v26  ;;  %v6062_v34 = vld [vmem:[#allocation8_spill] sm:$0xff] }
 0x4a2   :  { %v1901_v58 = vsel %vm235_vm4, %v6050_v49, %v3455_v7  ;;  %2793 = vmatprep.subr.bf16.mxu1 %v2792_v8  ;;  %v1909_v50 = vsel %vm235_vm4, %v3454_v14, %v6052_v62  ;;  %2837 = vmatprep.subr.bf16.mxu0 %v2836_v3  ;;  %v6056_v7 = vld [vmem:[#allocation11_spill] sm:$0xff]  ;;  %v3480_v47 = vunpack.i.h.bf16 %v5589_v0  ;;  %v3479_v30 = vunpack.i.l.bf16 %v5589_v0 }
 0x4a3   :  { %v1973_v28 = vsel %vm260_vm5, %v6054_v40, %v3470_v61  ;;  %v2794_v53 = vpack.c.bf16 %v1902_v2, %v1901_v58  ;;  %v2838_v11 = vpack.c.bf16 %v6056_v7, %v6055_v12  ;;  %v1972_v19 = vsel %vm260_vm5, %v6057_v17, %v3469_v42  ;;  %v1893_v45 = vpop.permute.xlu1 %1892  ;;  %v5720_v61 = vpop.permute.xlu0 %3507  ;;  %v6060_v42 = vld [vmem:[#allocation16_spill] sm:$0xff] }
 0x4a4   :  { %v2796_v33 = vpack.c.bf16 %v1970_v29, %v1969_v22  ;;  %v1894_v46 = vsel %vm235_vm4, %v3450_v48, %v3454_v14  ;;  %v2840_v55 = vpack.c.bf16 %v1909_v50, %v6058_v39  ;;  %v2798_v57 = vpack.c.bf16 %v1973_v28, %v1972_v19  ;;  %v6061_v48 = vld [vmem:[#allocation13_spill] sm:$0xff] }
 0x4a5   :  { %2795 = vmatpush1.bf16.msra.mxu1 %v2794_v53  ;;  %2839 = vmatpush1.bf16.msra.mxu0 %v2838_v11  ;;  %v6059_v54 = vunpack.i.h.bf16 %v6045_v41  ;;  %v1911_v44 = vsel %vm235_vm4, %v1893_v45, %v6060_v42  ;;  %v2842_v14 = vpack.c.bf16 %v1894_v46, %v6061_v48  ;;  %v6063_v6 = vunpack.i.l.bf16 %v6062_v34 }
 0x4a6   :  { %2797 = vmatprep.subr.bf16.mxu1 %v2796_v33  ;;  %2841 = vmatprep.subr.bf16.mxu0 %v2840_v55  ;;  %v6064_v2 = vunpack.i.h.bf16 %v6062_v34  ;;  %v3485_v8 = vunpack.i.h.bf16 %v5696_v38  ;;  %v3484_v21 = vunpack.i.l.bf16 %v5696_v38  ;;  %v1896_v36 = vsel %vm235_vm4, %v3464_v15, %v1893_v45 }
 0x4a7   :  { %v1910_v0 = vsel %vm235_vm4, %v3465_v37, %v6059_v54  ;;  %v1981_v18 = vsel %vm260_vm5, %v3479_v30, %v6063_v6  ;;  %v3495_v3 = vunpack.i.h.bf16 %v5613_v5  ;;  %v3494_v22 = vunpack.i.l.bf16 %v5613_v5  ;;  %v3488_v29 = vpop.permute.xlu1 %3487  ;;  %v3518_v62 = vpop.permute.xlu0 %3517 }
 0x4a8   :  { %v2844_v20 = vpack.c.bf16 %v1911_v44, %v1910_v0  ;;  %v1982_v41 = vsel %vm260_vm5, %v3480_v47, %v6064_v2  ;;  %v1895_v27 = vsel %vm235_vm4, %v3460_v52, %v3465_v37  ;;  %v3490_v49 = vunpack.i.h.bf16 %v3488_v29 }
 0x4a9   :  { %2799 = vmatpush1.bf16.msra.mxu1 %v2798_v57  ;;  %2843 = vmatpush1.bf16.msra.mxu0 %v2842_v14  ;;  %v3489_v58 = vunpack.i.l.bf16 %v3488_v29  ;;  %v2848_v38 = vpack.c.bf16 %v1982_v41, %v1981_v18  ;;  %v1983_v35 = vsel %vm260_vm5, %v5684_v1, %v5116_v9  ;;  %v1967_v15 = vsel %vm260_vm5, %v3475_v13, %v3480_v47 }
 0x4aa   :  { %2845 = vmatprep.subr.bf16.mxu0 %v2844_v20  ;;  %v1966_v5 = vsel %vm260_vm5, %v3474_v63, %v3479_v30  ;;  %v2846_v43 = vpack.c.bf16 %v1896_v36, %v1895_v27  ;;  %v6065_v16 = vunpack.i.h.bf16 %v5143_v31  ;;  %v6066_v50 = vunpack.i.h.bf16 %v5023_v51  ;;  %v6074_v36 = vld [vmem:[#allocation19_spill] sm:$0xff] }
 0x4ab   :  { %v1971_v9 = vsel %vm260_vm5, %v3484_v21, %v3485_v8  ;;  %v2041_v13 = vsel %vm285_vm6, %v3489_v58, %v3490_v49  ;;  %v6067_v63 = vunpack.i.h.bf16 %v5141_v23  ;;  %v6068_v26 = vunpack.i.l.bf16 %v5031_v32  ;;  %v3498_v28 = vpop.permute.xlu1 %3497 }
 0x4ac   :  { %v1974_v52 = vsel %vm260_vm5, %v6065_v16, %v3484_v21  ;;  %v2044_v37 = vsel %vm285_vm6, %v6066_v50, %v3489_v58  ;;  %v2800_v53 = vpack.c.bf16 %v2041_v13, %v1971_v9  ;;  %v3505_v12 = vunpack.i.h.bf16 %v5655_v25 }
 0x4ad   :  { %v2045_v31 = vsel %vm285_vm6, %v6067_v63, %v3495_v3  ;;  %v2053_v40 = vsel %vm285_vm6, %v3494_v22, %v6068_v26  ;;  %v2802_v51 = vpack.c.bf16 %v2044_v37, %v1974_v52  ;;  %2847 = vmatpush1.bf16.msra.mxu0 %v2846_v43  ;;  %v3504_v7 = vunpack.i.l.bf16 %v5655_v25 }
 0x4ae   :  { %v3500_v11 = vunpack.i.h.bf16 %v3498_v28  ;;  %v3499_v17 = vunpack.i.l.bf16 %v3498_v28  ;;  %2849 = vmatprep.subr.bf16.mxu0 %v2848_v38  ;;  %v2852_v23 = vpack.c.bf16 %v2053_v40, %v1983_v35  ;;  %v2850_v19 = vpack.c.bf16 %v1967_v15, %v1966_v5  ;;  %2801 = vmatprep.subr.bf16.mxu1 %v2800_v53 }
 0x4af   :  { %v3520_v47 = vunpack.i.h.bf16 %v3518_v62  ;;  %v3519_v30 = vunpack.i.l.bf16 %v3518_v62  ;;  %v2038_v32 = vsel %vm285_vm6, %v3490_v49, %v3494_v22  ;;  %v6069_v33 = vunpack.i.l.bf16 %v5206_v60  ;;  %2803 = vmatpush1.bf16.msra.mxu1 %v2802_v51  ;;  %v2037_v45 = vpop.permute.xlu1 %2036  ;;  %v2103_v62 = vpop.permute.xlu0 %2102 }
 0x4b0   :  { %v2042_v25 = vsel %vm285_vm6, %v3495_v3, %v3500_v11  ;;  %v2043_v39 = vsel %vm285_vm6, %v3499_v17, %v3504_v7  ;;  %v1968_v54 = vsel %vm260_vm5, %v3485_v8, %v5684_v1  ;;  %v6070_v0 = vunpack.i.h.bf16 %v5206_v60  ;;  %v6071_v60 = vld [vmem:[#allocation20_spill] sm:$0xff] }
 0x4b1   :  { %v2046_v46 = vsel %vm285_vm6, %v6069_v33, %v3499_v17  ;;  %2851 = vmatpush1.bf16.msra.mxu0 %v2850_v19  ;;  %v2804_v57 = vpack.c.bf16 %v2043_v39, %v2042_v25  ;;  %v2055_v44 = vsel %vm285_vm6, %v2037_v45, %v5151_v10  ;;  %v3510_v48 = vunpack.i.h.bf16 %v5720_v61 }
 0x4b2   :  { %v2806_v55 = vpack.c.bf16 %v2046_v46, %v2045_v31  ;;  %v2054_v42 = vsel %vm285_vm6, %v3505_v12, %v6070_v0  ;;  %2853 = vmatprep.subr.bf16.mxu0 %v2852_v23  ;;  %v3509_v14 = vunpack.i.l.bf16 %v5720_v61  ;;  %v2854_v20 = vpack.c.bf16 %v2038_v32, %v1968_v54 }
 0x4b3   :  { %v2856_v34 = vpack.c.bf16 %v2055_v44, %v2054_v42  ;;  %2805 = vmatprep.subr.bf16.mxu1 %v2804_v57  ;;  %v2040_v1 = vsel %vm285_vm6, %v3504_v7, %v2037_v45  ;;  %v6072_v6 = vunpack.i.l.bf16 %v6071_v60  ;;  %v6073_v2 = vunpack.i.h.bf16 %v6071_v60  ;;  %v3513_v41 = vpop.permute.xlu1 %3512 }
 0x4b4   :  { %2807 = vmatpush1.bf16.msra.mxu1 %v2806_v55  ;;  %v2039_v61 = vsel %vm285_vm6, %v3500_v11, %v3505_v12  ;;  %v3515_v8 = vunpack.i.h.bf16 %v3513_v41  ;;  %v3514_v21 = vunpack.i.l.bf16 %v3513_v41  ;;  %v6075_v3 = vunpack.i.l.bf16 %v6074_v36 }
 0x4b5   :  { %v2125_v18 = vsel %vm310_vm7, %v3519_v30, %v6072_v6  ;;  %v2126_v10 = vsel %vm310_vm7, %v3520_v47, %v6073_v2  ;;  %2855 = vmatpush1.bf16.msra.mxu0 %v2854_v20  ;;  %v6076_v29 = vunpack.i.h.bf16 %v6074_v36  ;;  %v2858_v49 = vpack.c.bf16 %v2040_v1, %v2039_v61 }
 0x4b6   :  { %2857 = vmatprep.subr.bf16.mxu0 %v2856_v34  ;;  %v2116_v22 = vsel %vm310_vm7, %v6075_v3, %v3509_v14  ;;  %v2860_v58 = vpack.c.bf16 %v2126_v10, %v2125_v18  ;;  %v2111_v38 = vsel %vm310_vm7, %v3515_v8, %v3520_v47  ;;  %v2110_v35 = vsel %vm310_vm7, %v3514_v21, %v3519_v30 }
 0x4b7   :  { %v2117_v27 = vsel %vm310_vm7, %v6076_v29, %v3510_v48  ;;  %v2113_v15 = vsel %vm310_vm7, %v3509_v14, %v3514_v21  ;;  %v2114_v5 = vsel %vm310_vm7, %v3510_v48, %v3515_v8  ;;  %v2097_v43 = vpop.permute.xlu1 %2096  ;;  %v2862_v50 = vpack.c.bf16 %v2111_v38, %v2110_v35 }
 0x4b8   :  { %v2808_v16 = vpack.c.bf16 %v2114_v5, %v2113_v15  ;;  %v2810_v52 = vpack.c.bf16 %v2117_v27, %v2116_v22  ;;  %v2115_v37 = vsel %vm310_vm7, %v2097_v43, %v2103_v62  ;;  %v2118_v63 = vsel %vm310_vm7, %v5248_v4, %v2097_v43  ;;  %v2314_v26 = vpop.permute.xlu0 %2313 }
 0x4b9   :  { %2859 = vmatpush1.bf16.msra.mxu0 %v2858_v49 }
 0x4ba   :  { %2861 = vmatprep.subr.bf16.mxu0 %v2860_v58  ;;  %2809 = vmatprep.subr.bf16.mxu1 %v2808_v16 }
 0x4bb   :  { %2811 = vmatpush1.bf16.msra.mxu1 %v2810_v52  ;;  %v2109_v9 = vpop.permute.xlu1 %2108 }
 0x4bc   :  { %2443 = vmatprep.subr.mxu1 %v2115_v37  ;;  %v2127_v13 = vsel %vm310_vm7, %v2109_v9, %v5372_v24  ;;  %v2112_v31 = vsel %vm310_vm7, %v2103_v62, %v2109_v9 }
 0x4bd   :  { %2863 = vmatpush1.bf16.msra.mxu0 %v2862_v50 }
 0x4be   :  { %2514 = vmatprep.subr.mxu0 %v2127_v13 }
 0x4bf   :  { %2444 = vmatpush1.msra.mxu1 %v2118_v63 }
 0x4c0   :  { %2456 = vmatmul.mubr.f32.vlgmr.msra.gmra.mrb[8].mxu1 %v5525_v56 }
 0x4c1   :  { %2515 = vmatpush1.msra.mxu0 %v2112_v31 }
 0x4c2   :  { %2527 = vmatmul.mubr.f32.vlgmr.msra.gmra.mrb[6].mxu0 %v5525_v56 }
 0x55d   :  { %v2386_v40 = vpop.f32.mrb[4].mxu0 }
 0x55e   :  { %v2387_v51 = vadd.f32 %v2386_v40, %v2314_v26  ;;  %v2388_v28 = vpop.f32.mrb[5].mxu0 }
 0x55f   :  { %v2389_v53 = vadd.f32 %v2388_v28, %v2314_v26 }
 0x560   :  { %2533 = vst [vmem:[%s5863_s8 + $0x90] sm:$0xff] %v2387_v51 }
 0x561   :  { %2534 = vst [vmem:[%s5863_s8 + $0x98] sm:$0xff] %v2389_v53 }
 0x593   :  { %v2457_v59 = vpop.f32.mrb[8].mxu1 }
 0x594   :  { %v2458_v4 = vadd.f32 %v2457_v59, %v2314_v26  ;;  %v2459_v24 = vpop.f32.mrb[9].mxu1 }
 0x595   :  { %v2528_v12 = vpop.f32.mrb[6].mxu0  ;;  %v2460_v7 = vadd.f32 %v2459_v24, %v2314_v26 }
 0x596   :  { %v2529_v11 = vadd.f32 %v2528_v12, %v2314_v26  ;;  %v2530_v56 = vpop.f32.mrb[7].mxu0  ;;  %2535 = vst [vmem:[%s5863_s8 + $0xa0] sm:$0xff] %v2458_v4 }
 0x597   :  { %v2531_v17 = vadd.f32 %v2530_v56, %v2314_v26  ;;  %2536 = vst [vmem:[%s5863_s8 + $0xa8] sm:$0xff] %v2460_v7 }
 0x598   :  { %2537 = vst [vmem:[%s5863_s8 + $0xb0] sm:$0xff] %v2529_v11 }
 0x599   :  { %2538 = vst [vmem:[%s5863_s8 + $0xb8] sm:$0xff] %v2531_v17 }

</bundles_post_ra>
